<compile_context>
chip_gen: v7x
topology: tpu7x:2x2x1
jax: 0.10.0
libtpu: 0.0.40
codegen_flags: <defaults>
</compile_context>

<pallas_src>
import functools
import math

import jax
import jax.numpy as jnp
from jax import lax
from jax.experimental import pallas as pl
from jax.experimental.pallas import tpu as pltpu

EPS = 1e-5

# Row-tile targets: kept small so the toy test exercises the multi-tile
# accumulation path; raise toward 512-1024 rows for production shapes
# (and roughly halve on v7x, which has 64 MiB VMEM).
TILE_M_TARGET = 128    # pixels per block for the 1x1-conv / apply kernels
TILE_H_TARGET = 8      # image rows per block for the 3x3-conv kernel
VMEM_LIMIT = 32 * 1024 * 1024


def _pick_row_tile(total, target, align=8):
    """Largest divisor of `total` that is <= target and a multiple of `align`."""
    if total <= target:
        return total
    for t in range(target, 0, -1):
        if total % t == 0 and t % align == 0:
            return t
    return total


# ----------------------------- Pallas kernels ------------------------------

def _mm_stats_kernel(*refs, fuse_norm):
    """1x1 conv tile: [optional per-(n,c) affine+ReLU prologue] -> bf16 matmul
    (f32 accumulate) -> store tile + accumulate per-(n,c) sum / sum-of-squares."""
    if fuse_norm:
        x_ref, sc_ref, sh_ref, w_ref, y_ref, s1_ref, s2_ref = refs
    else:
        x_ref, w_ref, y_ref, s1_ref, s2_ref = refs

    @pl.when(pl.program_id(1) == 0)
    def _init():
        s1_ref[...] = jnp.zeros_like(s1_ref)
        s2_ref[...] = jnp.zeros_like(s2_ref)

    x = x_ref[0]                                            # (TM, Cin) f32
    if fuse_norm:
        # SSN apply of the previous stage fused as a prologue (per-(n,c) affine).
        x = jnp.maximum(x * sc_ref[0] + sh_ref[0], 0.0)
    acc = jnp.dot(x.astype(jnp.bfloat16), w_ref[...],
                  preferred_element_type=jnp.float32)       # MXU, f32 accumulate
    y_ref[0] = acc
    s1_ref[0] = s1_ref[0] + jnp.sum(acc, axis=0, keepdims=True)
    s2_ref[0] = s2_ref[0] + jnp.sum(acc * acc, axis=0, keepdims=True)


def _conv3x3_stats_kernel(x_ref, w_ref, y_ref, s1_ref, s2_ref, *, th, w_out, c3):
    """3x3 conv tile: vertical taps pre-folded into channels (c3 = 3*Cin);
    horizontal taps formed in-kernel as static slices -> 3 matmuls of K=3*Cin."""
    @pl.when(pl.program_id(1) == 0)
    def _init():
        s1_ref[...] = jnp.zeros_like(s1_ref)
        s2_ref[...] = jnp.zeros_like(s2_ref)

    x = x_ref[0]                                            # (TH, W+2, 3*Cin) bf16
    cout = y_ref.shape[-1]
    acc = jnp.zeros((th * w_out, cout), jnp.float32)
    for kw in range(3):
        xs = x[:, kw:kw + w_out, :].reshape(th * w_out, c3)
        acc = acc + jnp.dot(xs, w_ref[kw], preferred_element_type=jnp.float32)
    y_ref[0] = acc
    s1_ref[0] = s1_ref[0] + jnp.sum(acc, axis=0, keepdims=True)
    s2_ref[0] = s2_ref[0] + jnp.sum(acc * acc, axis=0, keepdims=True)


def _affine_relu_kernel(x_ref, sc_ref, sh_ref, o_ref):
    o_ref[0] = jnp.maximum(x_ref[0] * sc_ref[0] + sh_ref[0], 0.0)


def _affine_add_relu_kernel(x_ref, res_ref, sc_ref, sh_ref, o_ref):
    o_ref[0] = jnp.maximum(x_ref[0] * sc_ref[0] + sh_ref[0] + res_ref[0], 0.0)


# ------------------------------ JAX wrappers --------------------------------

def _conv1x1_with_stats(x, w_bf16, scale=None, shift=None):
    """x: (N, HW, Cin) f32, w: (Cin, Cout) bf16.  Returns (y, sum, sumsq)."""
    n, hw, cin = x.shape
    cout = w_bf16.shape[-1]
    tm = _pick_row_tile(hw, TILE_M_TARGET)
    grid = (n, hw // tm)
    fuse = scale is not None

    in_specs = [pl.BlockSpec((1, tm, cin), lambda i, j: (i, j, 0))]
    args = [x]
    if fuse:
        in_specs += [pl.BlockSpec((1, 1, cin), lambda i, j: (i, 0, 0)),
                     pl.BlockSpec((1, 1, cin), lambda i, j: (i, 0, 0))]
        args += [scale.reshape(n, 1, cin), shift.reshape(n, 1, cin)]
    in_specs.append(pl.BlockSpec((cin, cout), lambda i, j: (0, 0)))
    args.append(w_bf16)

    flops = 2 * n * hw * cin * cout
    bytes_accessed = 4 * n * hw * cin + 4 * n * hw * cout + 2 * cin * cout

    y, s1, s2 = pl.pallas_call(
        functools.partial(_mm_stats_kernel, fuse_norm=fuse),
        grid=grid,
        in_specs=in_specs,
        out_specs=[pl.BlockSpec((1, tm, cout), lambda i, j: (i, j, 0)),
                   pl.BlockSpec((1, 1, cout), lambda i, j: (i, 0, 0)),
                   pl.BlockSpec((1, 1, cout), lambda i, j: (i, 0, 0))],
        out_shape=[jax.ShapeDtypeStruct((n, hw, cout), jnp.float32),
                   jax.ShapeDtypeStruct((n, 1, cout), jnp.float32),
                   jax.ShapeDtypeStruct((n, 1, cout), jnp.float32)],
        compiler_params=pltpu.CompilerParams(
            dimension_semantics=("parallel", "arbitrary"),
            vmem_limit_bytes=VMEM_LIMIT),
        cost_estimate=pl.CostEstimate(flops=flops, transcendentals=0,
                                      bytes_accessed=bytes_accessed),
    )(*args)
    return y, s1, s2


def _conv3x3_with_stats(xn, w2):
    """xn: (N, H, W, C1) f32 (already SSN1-normalized).  3x3 conv, pad=1, stride=1.
    Returns (y (N,HW,Cout) f32, sum, sumsq)."""
    n, h, w, c1 = xn.shape
    cout = w2.shape[-1]
    # Fold vertical taps into channels (3x, instead of a 9x im2col through HBM):
    # xs[n, h, wp, kh*C1 + c] = pad(xn)[n, h + kh, wp, c]
    xp = jnp.pad(xn, ((0, 0), (1, 1), (1, 1), (0, 0)))
    xs = jnp.concatenate([xp[:, kh:kh + h, :, :] for kh in range(3)], axis=-1)
    xs = xs.astype(jnp.bfloat16)                            # (N, H, W+2, 3*C1)
    # weights: HWIO (kh, kw, c, o) -> (kw, kh*C1 + c, o)
    wk = jnp.transpose(w2, (1, 0, 2, 3)).reshape(3, 3 * c1, cout).astype(jnp.bfloat16)

    th = _pick_row_tile(h, TILE_H_TARGET, align=1)
    assert (th * w) % 8 == 0 or th * w == h * w
    grid = (n, h // th)
    wp_ = w + 2
    c3 = 3 * c1

    flops = 2 * n * h * w * 9 * c1 * cout
    bytes_accessed = 2 * n * h * wp_ * c3 + 4 * n * h * w * cout + 2 * 3 * c3 * cout

    y, s1, s2 = pl.pallas_call(
        functools.partial(_conv3x3_stats_kernel, th=th, w_out=w, c3=c3),
        grid=grid,
        in_specs=[pl.BlockSpec((1, th, wp_, c3), lambda i, j: (i, j, 0, 0)),
                  pl.BlockSpec((3, c3, cout), lambda i, j: (0, 0, 0))],
        out_specs=[pl.BlockSpec((1, th * w, cout), lambda i, j: (i, j, 0)),
                   pl.BlockSpec((1, 1, cout), lambda i, j: (i, 0, 0)),
                   pl.BlockSpec((1, 1, cout), lambda i, j: (i, 0, 0))],
        out_shape=[jax.ShapeDtypeStruct((n, h * w, cout), jnp.float32),
                   jax.ShapeDtypeStruct((n, 1, cout), jnp.float32),
                   jax.ShapeDtypeStruct((n, 1, cout), jnp.float32)],
        compiler_params=pltpu.CompilerParams(
            dimension_semantics=("parallel", "arbitrary"),
            vmem_limit_bytes=VMEM_LIMIT),
        cost_estimate=pl.CostEstimate(flops=flops, transcendentals=0,
                                      bytes_accessed=bytes_accessed),
    )(xs, wk)
    return y, s1, s2


def _ssn_apply(y, scale, shift):
    n, hw, c = y.shape
    tm = _pick_row_tile(hw, TILE_M_TARGET)
    return pl.pallas_call(
        _affine_relu_kernel,
        grid=(n, hw // tm),
        in_specs=[pl.BlockSpec((1, tm, c), lambda i, j: (i, j, 0)),
                  pl.BlockSpec((1, 1, c), lambda i, j: (i, 0, 0)),
                  pl.BlockSpec((1, 1, c), lambda i, j: (i, 0, 0))],
        out_specs=pl.BlockSpec((1, tm, c), lambda i, j: (i, j, 0)),
        out_shape=jax.ShapeDtypeStruct((n, hw, c), jnp.float32),
        compiler_params=pltpu.CompilerParams(
            dimension_semantics=("parallel", "parallel"),
            vmem_limit_bytes=VMEM_LIMIT),
    )(y, scale.reshape(n, 1, c), shift.reshape(n, 1, c))


def _ssn_apply_add_relu(y, res, scale, shift):
    n, hw, c = y.shape
    tm = _pick_row_tile(hw, TILE_M_TARGET)
    return pl.pallas_call(
        _affine_add_relu_kernel,
        grid=(n, hw // tm),
        in_specs=[pl.BlockSpec((1, tm, c), lambda i, j: (i, j, 0)),
                  pl.BlockSpec((1, tm, c), lambda i, j: (i, j, 0)),
                  pl.BlockSpec((1, 1, c), lambda i, j: (i, 0, 0)),
                  pl.BlockSpec((1, 1, c), lambda i, j: (i, 0, 0))],
        out_specs=pl.BlockSpec((1, tm, c), lambda i, j: (i, j, 0)),
        out_shape=jax.ShapeDtypeStruct((n, hw, c), jnp.float32),
        input_output_aliases={1: 0},   # reuse the residual buffer for the output
        compiler_params=pltpu.CompilerParams(
            dimension_semantics=("parallel", "parallel"),
            vmem_limit_bytes=VMEM_LIMIT),
    )(y, res, scale.reshape(n, 1, c), shift.reshape(n, 1, c))


def _ssn_scale_shift(s1, s2, gamma, beta, mean_w, var_w, hw):
    """Blend IN/LN/BN stats from per-(n,c) sum / sum-of-squares (tiny (N,C) math)
    into per-(n,c) scale/shift so SSN-apply is `x * scale + shift`."""
    s1 = s1[:, 0, :]
    s2 = s2[:, 0, :]
    mean_in = s1 / hw                                                   # (N, C)
    var_in = jnp.maximum(s2 / hw - mean_in * mean_in, 0.0) * (hw / (hw - 1.0))
    temp = var_in + mean_in * mean_in
    mean_ln = jnp.mean(mean_in, axis=1, keepdims=True)                  # (N, 1)
    var_ln = jnp.mean(temp, axis=1, keepdims=True) - mean_ln * mean_ln
    mean_bn = jnp.mean(mean_in, axis=0, keepdims=True)                  # (1, C)
    var_bn = jnp.mean(temp, axis=0, keepdims=True) - mean_bn * mean_bn
    mw = jax.nn.softmax(mean_w.astype(jnp.float32))
    vw = jax.nn.softmax(var_w.astype(jnp.float32))
    mean = mw[0] * mean_in + mw[1] * mean_ln + mw[2] * mean_bn
    var = vw[0] * var_in + vw[1] * var_ln + vw[2] * var_bn
    scale = gamma[None, :] * lax.rsqrt(var + EPS)
    shift = beta[None, :] - mean * scale
    return scale, shift


def bottleneck_forward(x_nchw, p):
    """Bottleneck.forward with downsample=None, stride=1 (inplanes == planes*4)."""
    n, cin, h, w = x_nchw.shape
    hw = h * w
    planes = p["w1"].shape[1]
    outp = p["w3"].shape[1]
    assert cin == outp, "identity residual requires inplanes == planes*4"

    x = jnp.transpose(x_nchw, (0, 2, 3, 1)).astype(jnp.float32).reshape(n, hw, cin)

    # conv1 (1x1) + SSN1 statistics in one pass.
    y1, a1, b1 = _conv1x1_with_stats(x, p["w1"].astype(jnp.bfloat16))
    sc1, sh1 = _ssn_scale_shift(a1, b1, p["g1"], p["b1"], p["mw1"], p["vw1"], hw)
    # SSN1 apply + ReLU (separate pass: conv2's zero padding must see normalized data).
    y1n = _ssn_apply(y1, sc1, sh1).reshape(n, h, w, planes)

    # conv2 (3x3) + SSN2 statistics in one pass.
    y2, a2, b2 = _conv3x3_with_stats(y1n, p["w2"])
    sc2, sh2 = _ssn_scale_shift(a2, b2, p["g2"], p["b2"], p["mw2"], p["vw2"], hw)

    # SSN2 apply + ReLU fused as conv3's prologue; conv3 (1x1) + SSN3 statistics.
    y3, a3, b3 = _conv1x1_with_stats(y2, p["w3"].astype(jnp.bfloat16),
                                     scale=sc2, shift=sh2)
    sc3, sh3 = _ssn_scale_shift(a3, b3, p["g3"], p["b3"], p["mw3"], p["vw3"], hw)

    # SSN3 apply + residual add + ReLU (residual buffer aliased as output).
    out = _ssn_apply_add_relu(y3, x, sc3, sh3)
    return jnp.transpose(out.reshape(n, h, w, outp), (0, 3, 1, 2))


# ----------------------------- pure-JAX reference ----------------------------

def _bf16(a):
    # Same operand rounding as the bf16 MXU path (accumulation stays f32).
    return a.astype(jnp.bfloat16).astype(jnp.float32)


def _ssn_ref(x_nhwc, gamma, beta, mean_w, var_w):
    n, h, wd, c = x_nhwc.shape
    x = x_nhwc.reshape(n, h * wd, c)
    mean_in = x.mean(1, keepdims=True)
    var_in = ((x - mean_in) ** 2).sum(1, keepdims=True) / (h * wd - 1)
    temp = var_in + mean_in ** 2
    mean_ln = mean_in.mean(2, keepdims=True)
    var_ln = temp.mean(2, keepdims=True) - mean_ln ** 2
    mean_bn = mean_in.mean(0, keepdims=True)
    var_bn = temp.mean(0, keepdims=True) - mean_bn ** 2
    mw = jax.nn.softmax(mean_w)
    vw = jax.nn.softmax(var_w)
    mean = mw[0] * mean_in + mw[1] * mean_ln + mw[2] * mean_bn
    var = vw[0] * var_in + vw[1] * var_ln + vw[2] * var_bn
    xn = (x - mean) * lax.rsqrt(var + EPS)
    return xn.reshape(n, h, wd, c) * gamma.reshape(1, 1, 1, c) + beta.reshape(1, 1, 1, c)


def bottleneck_ref(x_nchw, p):
    x = jnp.transpose(x_nchw, (0, 2, 3, 1)).astype(jnp.float32)
    out = jnp.einsum("nhwc,cd->nhwd", _bf16(x), _bf16(p["w1"]))
    out = jax.nn.relu(_ssn_ref(out, p["g1"], p["b1"], p["mw1"], p["vw1"]))
    out = lax.conv_general_dilated(_bf16(out), _bf16(p["w2"]), (1, 1), "SAME",
                                   dimension_numbers=("NHWC", "HWIO", "NHWC"))
    out = jax.nn.relu(_ssn_ref(out, p["g2"], p["b2"], p["mw2"], p["vw2"]))
    out = jnp.einsum("nhwc,cd->nhwd", _bf16(out), _bf16(p["w3"]))
    out = _ssn_ref(out, p["g3"], p["b3"], p["mw3"], p["vw3"])
    out = jax.nn.relu(out + x)
    return jnp.transpose(out, (0, 3, 1, 2))


# ------------------------------ params & main --------------------------------

def init_params(key, inplanes, planes):
    outp = planes * 4
    ks = jax.random.split(key, 5)

    def kaiming(k, shape, n_fan):
        return jax.random.normal(k, shape, jnp.float32) * math.sqrt(2.0 / n_fan)

    return dict(
        w1=kaiming(ks[0], (inplanes, planes), 1 * 1 * planes),      # conv1 1x1 (Cin,Cout)
        w2=kaiming(ks[1], (3, 3, planes, planes), 3 * 3 * planes),  # conv2 3x3 HWIO
        w3=kaiming(ks[2], (planes, outp), 1 * 1 * outp),            # conv3 1x1 (Cin,Cout)
        g1=jnp.ones((planes,), jnp.float32), b1=jnp.zeros((planes,), jnp.float32),
        g2=jnp.ones((planes,), jnp.float32), b2=jnp.zeros((planes,), jnp.float32),
        # last_gamma=True would init gamma3 to 0 (output reduces to relu(x)); use
        # small deterministic values so the full path is exercised.
        g3=0.1 * jax.random.normal(ks[3], (outp,), jnp.float32),
        b3=0.05 * jax.random.normal(ks[4], (outp,), jnp.float32),
        mw1=jnp.ones((3,), jnp.float32), vw1=jnp.ones((3,), jnp.float32),
        mw2=jnp.ones((3,), jnp.float32), vw2=jnp.ones((3,), jnp.float32),
        mw3=jnp.ones((3,), jnp.float32), vw3=jnp.ones((3,), jnp.float32),
    )


if __name__ == "__main__":
    key = jax.random.PRNGKey(0)
    kx, kp = jax.random.split(key)
    inplanes, planes = 16, 4          # expansion=4 -> out channels == inplanes, downsample=None
    N, H, W = 2, 16, 16
    x = jax.random.normal(kx, (N, inplanes, H, W), jnp.float32)   # NCHW like PyTorch
    params = init_params(kp, inplanes, planes)

    out = jax.jit(bottleneck_forward)(x, params)
    out = jax.block_until_ready(out)

    ref = bottleneck_ref(x, params)
    assert out.shape == (N, inplanes, H, W)
    assert bool(jnp.all(jnp.isfinite(out)))
    err = float(jnp.max(jnp.abs(out - ref)))
    assert bool(jnp.allclose(out, ref, rtol=1e-2, atol=1e-2)), err
    print("KERNEL_OK")
</pallas_src>

<mosaic_0001>
module attributes {stable_mosaic.version = 11 : i64} {
  func.func @_mm_stats_kernel(%arg0: i32, %arg1: i32, %arg2: memref<1x128x16xf32, #tpu.memory_space<vmem>>, %arg3: memref<16x4xbf16, #tpu.memory_space<vmem>>, %arg4: memref<1x128x4xf32, #tpu.memory_space<vmem>>, %arg5: memref<1x1x4xf32, #tpu.memory_space<vmem>>, %arg6: memref<1x1x4xf32, #tpu.memory_space<vmem>>) attributes {dimension_semantics = [#tpu.dimension_semantics<parallel>, #tpu.dimension_semantics<arbitrary>], iteration_bounds = array<i64: 2, 2>, scalar_prefetch = 0 : i64, scratch_operands = 0 : i64, tpu.core_type = #tpu.core_type<tc>, window_params = [{transform_indices = @transform_0, window_bounds = array<i64: 1, 128, 16>}, {pipeline_mode = #tpu.pipeline_mode<synchronous>, transform_indices = @transform_1, window_bounds = array<i64: 16, 4>}, {transform_indices = @transform_2, window_bounds = array<i64: 1, 128, 4>}, {transform_indices = @transform_3, window_bounds = array<i64: 1, 1, 4>}, {transform_indices = @transform_4, window_bounds = array<i64: 1, 1, 4>}]} {
    %c0_i32 = arith.constant 0 : i32
    %0 = arith.cmpi eq, %arg1, %c0_i32 : i32
    %1 = arith.extui %0 : i1 to i32
    %c0_i32_0 = arith.constant 0 : i32
    %2 = arith.cmpi ne, %1, %c0_i32_0 : i32
    scf.if %2 {
      %cst_22 = arith.constant 0.000000e+00 : f32
      %28 = vector.broadcast %cst_22 : f32 to vector<1x1x4xf32>
      %c0_23 = arith.constant 0 : index
      %c0_24 = arith.constant 0 : index
      %c0_25 = arith.constant 0 : index
      %29 = vector.load %arg5[%c0_23, %c0_24, %c0_25] : memref<1x1x4xf32, #tpu.memory_space<vmem>>, vector<1x1x4xf32>
      tpu.vector_store %arg5[%c0_23, %c0_24, %c0_25], %28 {strides = array<i32>} : memref<1x1x4xf32, #tpu.memory_space<vmem>>, vector<1x1x4xf32>,
      %cst_26 = arith.constant 0.000000e+00 : f32
      %30 = vector.broadcast %cst_26 : f32 to vector<1x1x4xf32>
      %c0_27 = arith.constant 0 : index
      %c0_28 = arith.constant 0 : index
      %c0_29 = arith.constant 0 : index
      %31 = vector.load %arg6[%c0_27, %c0_28, %c0_29] : memref<1x1x4xf32, #tpu.memory_space<vmem>>, vector<1x1x4xf32>
      tpu.vector_store %arg6[%c0_27, %c0_28, %c0_29], %30 {strides = array<i32>} : memref<1x1x4xf32, #tpu.memory_space<vmem>>, vector<1x1x4xf32>,
    } else {
    }
    %c0 = arith.constant 0 : index
    %c0_1 = arith.constant 0 : index
    %c0_2 = arith.constant 0 : index
    %3 = vector.load %arg2[%c0, %c0_1, %c0_2] : memref<1x128x16xf32, #tpu.memory_space<vmem>>, vector<1x128x16xf32>
    %4 = vector.shape_cast %3 : vector<1x128x16xf32> to vector<128x16xf32>
    %5 = arith.truncf %4 : vector<128x16xf32> to vector<128x16xbf16>
    %c0_3 = arith.constant 0 : index
    %c0_4 = arith.constant 0 : index
    %6 = vector.load %arg3[%c0_3, %c0_4] : memref<16x4xbf16, #tpu.memory_space<vmem>>, vector<16x4xbf16>
    %cst = arith.constant dense<0.000000e+00> : vector<128x4xf32>
    %7 = tpu.matmul %5, %6, %cst {dimension_numbers = #tpu.dot_dimension_numbers<[1], [0], [0], [1], [0, 0, 1, 1], [], []>} : vector<128x16xbf16>, vector<16x4xbf16>, vector<128x4xf32> -> vector<128x4xf32>
    %c0_5 = arith.constant 0 : index
    %c0_6 = arith.constant 0 : index
    %c0_7 = arith.constant 0 : index
    %8 = vector.load %arg4[%c0_5, %c0_6, %c0_7] : memref<1x128x4xf32, #tpu.memory_space<vmem>>, vector<1x128x4xf32>
    %9 = vector.shape_cast %8 : vector<1x128x4xf32> to vector<128x4xf32>
    %10 = vector.shape_cast %7 : vector<128x4xf32> to vector<1x128x4xf32>
    tpu.vector_store %arg4[%c0_5, %c0_6, %c0_7], %10 {strides = array<i32>} : memref<1x128x4xf32, #tpu.memory_space<vmem>>, vector<1x128x4xf32>,
    %c0_8 = arith.constant 0 : index
    %c0_9 = arith.constant 0 : index
    %c0_10 = arith.constant 0 : index
    %11 = vector.load %arg5[%c0_8, %c0_9, %c0_10] : memref<1x1x4xf32, #tpu.memory_space<vmem>>, vector<1x1x4xf32>
    %12 = vector.shape_cast %11 : vector<1x1x4xf32> to vector<1x4xf32>
    %cst_11 = arith.constant dense<0.000000e+00> : vector<4xf32>
    %13 = vector.multi_reduction <add>, %7, %cst_11 [0] : vector<128x4xf32> to vector<4xf32>
    %14 = vector.shape_cast %13 : vector<4xf32> to vector<1x4xf32>
    %15 = arith.addf %12, %14 : vector<1x4xf32>
    %c0_12 = arith.constant 0 : index
    %c0_13 = arith.constant 0 : index
    %c0_14 = arith.constant 0 : index
    %16 = vector.load %arg5[%c0_12, %c0_13, %c0_14] : memref<1x1x4xf32, #tpu.memory_space<vmem>>, vector<1x1x4xf32>
    %17 = vector.shape_cast %16 : vector<1x1x4xf32> to vector<1x4xf32>
    %18 = vector.shape_cast %15 : vector<1x4xf32> to vector<1x1x4xf32>
    tpu.vector_store %arg5[%c0_12, %c0_13, %c0_14], %18 {strides = array<i32>} : memref<1x1x4xf32, #tpu.memory_space<vmem>>, vector<1x1x4xf32>,
    %c0_15 = arith.constant 0 : index
    %c0_16 = arith.constant 0 : index
    %c0_17 = arith.constant 0 : index
    %19 = vector.load %arg6[%c0_15, %c0_16, %c0_17] : memref<1x1x4xf32, #tpu.memory_space<vmem>>, vector<1x1x4xf32>
    %20 = vector.shape_cast %19 : vector<1x1x4xf32> to vector<1x4xf32>
    %21 = arith.mulf %7, %7 : vector<128x4xf32>
    %cst_18 = arith.constant dense<0.000000e+00> : vector<4xf32>
    %22 = vector.multi_reduction <add>, %21, %cst_18 [0] : vector<128x4xf32> to vector<4xf32>
    %23 = vector.shape_cast %22 : vector<4xf32> to vector<1x4xf32>
    %24 = arith.addf %20, %23 : vector<1x4xf32>
    %c0_19 = arith.constant 0 : index
    %c0_20 = arith.constant 0 : index
    %c0_21 = arith.constant 0 : index
    %25 = vector.load %arg6[%c0_19, %c0_20, %c0_21] : memref<1x1x4xf32, #tpu.memory_space<vmem>>, vector<1x1x4xf32>
    %26 = vector.shape_cast %25 : vector<1x1x4xf32> to vector<1x4xf32>
    %27 = vector.shape_cast %24 : vector<1x4xf32> to vector<1x1x4xf32>
    tpu.vector_store %arg6[%c0_19, %c0_20, %c0_21], %27 {strides = array<i32>} : memref<1x1x4xf32, #tpu.memory_space<vmem>>, vector<1x1x4xf32>,
    return
  }
  func.func @transform_0(%arg0: i32, %arg1: i32) -> (i32, i32, i32) {
    %c0_i32 = arith.constant 0 : i32
    %c0_i32_0 = arith.constant 0 : i32
    return %arg0, %arg1, %c0_i32 : i32, i32, i32
  }
  func.func @transform_1(%arg0: i32, %arg1: i32) -> (i32, i32) {
    %c0_i32 = arith.constant 0 : i32
    %c0_i32_0 = arith.constant 0 : i32
    %c0_i32_1 = arith.constant 0 : i32
    return %c0_i32, %c0_i32_0 : i32, i32
  }
  func.func @transform_2(%arg0: i32, %arg1: i32) -> (i32, i32, i32) {
    %c0_i32 = arith.constant 0 : i32
    %c0_i32_0 = arith.constant 0 : i32
    return %arg0, %arg1, %c0_i32 : i32, i32, i32
  }
  func.func @transform_3(%arg0: i32, %arg1: i32) -> (i32, i32, i32) {
    %c0_i32 = arith.constant 0 : i32
    %c0_i32_0 = arith.constant 0 : i32
    %c0_i32_1 = arith.constant 0 : i32
    return %arg0, %c0_i32, %c0_i32_0 : i32, i32, i32
  }
  func.func @transform_4(%arg0: i32, %arg1: i32) -> (i32, i32, i32) {
    %c0_i32 = arith.constant 0 : i32
    %c0_i32_0 = arith.constant 0 : i32
    %c0_i32_1 = arith.constant 0 : i32
    return %arg0, %c0_i32, %c0_i32_0 : i32, i32, i32
  }
}

module attributes {stable_mosaic.version = 11 : i64} {
  func.func @_affine_relu_kernel(%arg0: i32, %arg1: i32, %arg2: memref<1x128x4xf32, #tpu.memory_space<vmem>>, %arg3: memref<1x1x4xf32, #tpu.memory_space<vmem>>, %arg4: memref<1x1x4xf32, #tpu.memory_space<vmem>>, %arg5: memref<1x128x4xf32, #tpu.memory_space<vmem>>) attributes {dimension_semantics = [#tpu.dimension_semantics<parallel>, #tpu.dimension_semantics<parallel>], iteration_bounds = array<i64: 2, 2>, scalar_prefetch = 0 : i64, scratch_operands = 0 : i64, tpu.core_type = #tpu.core_type<tc>, window_params = [{transform_indices = @transform_0, window_bounds = array<i64: 1, 128, 4>}, {transform_indices = @transform_1, window_bounds = array<i64: 1, 1, 4>}, {transform_indices = @transform_2, window_bounds = array<i64: 1, 1, 4>}, {transform_indices = @transform_3, window_bounds = array<i64: 1, 128, 4>}]} {
    %c0 = arith.constant 0 : index
    %c0_0 = arith.constant 0 : index
    %c0_1 = arith.constant 0 : index
    %0 = vector.load %arg2[%c0, %c0_0, %c0_1] : memref<1x128x4xf32, #tpu.memory_space<vmem>>, vector<1x128x4xf32>
    %1 = vector.shape_cast %0 : vector<1x128x4xf32> to vector<128x4xf32>
    %c0_2 = arith.constant 0 : index
    %c0_3 = arith.constant 0 : index
    %c0_4 = arith.constant 0 : index
    %2 = vector.load %arg3[%c0_2, %c0_3, %c0_4] : memref<1x1x4xf32, #tpu.memory_space<vmem>>, vector<1x1x4xf32>
    %3 = vector.shape_cast %2 : vector<1x1x4xf32> to vector<1x4xf32>
    %4 = vector.broadcast %3 : vector<1x4xf32> to vector<128x4xf32>
    %5 = arith.mulf %1, %4 : vector<128x4xf32>
    %c0_5 = arith.constant 0 : index
    %c0_6 = arith.constant 0 : index
    %c0_7 = arith.constant 0 : index
    %6 = vector.load %arg4[%c0_5, %c0_6, %c0_7] : memref<1x1x4xf32, #tpu.memory_space<vmem>>, vector<1x1x4xf32>
    %7 = vector.shape_cast %6 : vector<1x1x4xf32> to vector<1x4xf32>
    %8 = vector.broadcast %7 : vector<1x4xf32> to vector<128x4xf32>
    %9 = arith.addf %5, %8 : vector<128x4xf32>
    %cst = arith.constant 0.000000e+00 : f32
    %10 = vector.broadcast %cst : f32 to vector<128x4xf32>
    %11 = arith.maximumf %9, %10 : vector<128x4xf32>
    %c0_8 = arith.constant 0 : index
    %c0_9 = arith.constant 0 : index
    %c0_10 = arith.constant 0 : index
    %12 = vector.load %arg5[%c0_8, %c0_9, %c0_10] : memref<1x128x4xf32, #tpu.memory_space<vmem>>, vector<1x128x4xf32>
    %13 = vector.shape_cast %12 : vector<1x128x4xf32> to vector<128x4xf32>
    %14 = vector.shape_cast %11 : vector<128x4xf32> to vector<1x128x4xf32>
    tpu.vector_store %arg5[%c0_8, %c0_9, %c0_10], %14 {strides = array<i32>} : memref<1x128x4xf32, #tpu.memory_space<vmem>>, vector<1x128x4xf32>,
    return
  }
  func.func @transform_0(%arg0: i32, %arg1: i32) -> (i32, i32, i32) {
    %c0_i32 = arith.constant 0 : i32
    %c0_i32_0 = arith.constant 0 : i32
    return %arg0, %arg1, %c0_i32 : i32, i32, i32
  }
  func.func @transform_1(%arg0: i32, %arg1: i32) -> (i32, i32, i32) {
    %c0_i32 = arith.constant 0 : i32
    %c0_i32_0 = arith.constant 0 : i32
    %c0_i32_1 = arith.constant 0 : i32
    return %arg0, %c0_i32, %c0_i32_0 : i32, i32, i32
  }
  func.func @transform_2(%arg0: i32, %arg1: i32) -> (i32, i32, i32) {
    %c0_i32 = arith.constant 0 : i32
    %c0_i32_0 = arith.constant 0 : i32
    %c0_i32_1 = arith.constant 0 : i32
    return %arg0, %c0_i32, %c0_i32_0 : i32, i32, i32
  }
  func.func @transform_3(%arg0: i32, %arg1: i32) -> (i32, i32, i32) {
    %c0_i32 = arith.constant 0 : i32
    %c0_i32_0 = arith.constant 0 : i32
    return %arg0, %arg1, %c0_i32 : i32, i32, i32
  }
}

module attributes {stable_mosaic.version = 11 : i64} {
  func.func @_mm_stats_kernel(%arg0: i32, %arg1: i32, %arg2: memref<1x128x4xf32, #tpu.memory_space<vmem>>, %arg3: memref<1x1x4xf32, #tpu.memory_space<vmem>>, %arg4: memref<1x1x4xf32, #tpu.memory_space<vmem>>, %arg5: memref<4x16xbf16, #tpu.memory_space<vmem>>, %arg6: memref<1x128x16xf32, #tpu.memory_space<vmem>>, %arg7: memref<1x1x16xf32, #tpu.memory_space<vmem>>, %arg8: memref<1x1x16xf32, #tpu.memory_space<vmem>>) attributes {dimension_semantics = [#tpu.dimension_semantics<parallel>, #tpu.dimension_semantics<arbitrary>], iteration_bounds = array<i64: 2, 2>, scalar_prefetch = 0 : i64, scratch_operands = 0 : i64, tpu.core_type = #tpu.core_type<tc>, window_params = [{transform_indices = @transform_0, window_bounds = array<i64: 1, 128, 4>}, {transform_indices = @transform_1, window_bounds = array<i64: 1, 1, 4>}, {transform_indices = @transform_2, window_bounds = array<i64: 1, 1, 4>}, {pipeline_mode = #tpu.pipeline_mode<synchronous>, transform_indices = @transform_3, window_bounds = array<i64: 4, 16>}, {transform_indices = @transform_4, window_bounds = array<i64: 1, 128, 16>}, {transform_indices = @transform_5, window_bounds = array<i64: 1, 1, 16>}, {transform_indices = @transform_6, window_bounds = array<i64: 1, 1, 16>}]} {
    %c0_i32 = arith.constant 0 : i32
    %0 = arith.cmpi eq, %arg1, %c0_i32 : i32
    %1 = arith.extui %0 : i1 to i32
    %c0_i32_0 = arith.constant 0 : i32
    %2 = arith.cmpi ne, %1, %c0_i32_0 : i32
    scf.if %2 {
      %cst_29 = arith.constant 0.000000e+00 : f32
      %38 = vector.broadcast %cst_29 : f32 to vector<1x1x16xf32>
      %c0_30 = arith.constant 0 : index
      %c0_31 = arith.constant 0 : index
      %c0_32 = arith.constant 0 : index
      %39 = vector.load %arg7[%c0_30, %c0_31, %c0_32] : memref<1x1x16xf32, #tpu.memory_space<vmem>>, vector<1x1x16xf32>
      tpu.vector_store %arg7[%c0_30, %c0_31, %c0_32], %38 {strides = array<i32>} : memref<1x1x16xf32, #tpu.memory_space<vmem>>, vector<1x1x16xf32>,
      %cst_33 = arith.constant 0.000000e+00 : f32
      %40 = vector.broadcast %cst_33 : f32 to vector<1x1x16xf32>
      %c0_34 = arith.constant 0 : index
      %c0_35 = arith.constant 0 : index
      %c0_36 = arith.constant 0 : index
      %41 = vector.load %arg8[%c0_34, %c0_35, %c0_36] : memref<1x1x16xf32, #tpu.memory_space<vmem>>, vector<1x1x16xf32>
      tpu.vector_store %arg8[%c0_34, %c0_35, %c0_36], %40 {strides = array<i32>} : memref<1x1x16xf32, #tpu.memory_space<vmem>>, vector<1x1x16xf32>,
    } else {
    }
    %c0 = arith.constant 0 : index
    %c0_1 = arith.constant 0 : index
    %c0_2 = arith.constant 0 : index
    %3 = vector.load %arg2[%c0, %c0_1, %c0_2] : memref<1x128x4xf32, #tpu.memory_space<vmem>>, vector<1x128x4xf32>
    %4 = vector.shape_cast %3 : vector<1x128x4xf32> to vector<128x4xf32>
    %c0_3 = arith.constant 0 : index
    %c0_4 = arith.constant 0 : index
    %c0_5 = arith.constant 0 : index
    %5 = vector.load %arg3[%c0_3, %c0_4, %c0_5] : memref<1x1x4xf32, #tpu.memory_space<vmem>>, vector<1x1x4xf32>
    %6 = vector.shape_cast %5 : vector<1x1x4xf32> to vector<1x4xf32>
    %7 = vector.broadcast %6 : vector<1x4xf32> to vector<128x4xf32>
    %8 = arith.mulf %4, %7 : vector<128x4xf32>
    %c0_6 = arith.constant 0 : index
    %c0_7 = arith.constant 0 : index
    %c0_8 = arith.constant 0 : index
    %9 = vector.load %arg4[%c0_6, %c0_7, %c0_8] : memref<1x1x4xf32, #tpu.memory_space<vmem>>, vector<1x1x4xf32>
    %10 = vector.shape_cast %9 : vector<1x1x4xf32> to vector<1x4xf32>
    %11 = vector.broadcast %10 : vector<1x4xf32> to vector<128x4xf32>
    %12 = arith.addf %8, %11 : vector<128x4xf32>
    %cst = arith.constant 0.000000e+00 : f32
    %13 = vector.broadcast %cst : f32 to vector<128x4xf32>
    %14 = arith.maximumf %12, %13 : vector<128x4xf32>
    %15 = arith.truncf %14 : vector<128x4xf32> to vector<128x4xbf16>
    %c0_9 = arith.constant 0 : index
    %c0_10 = arith.constant 0 : index
    %16 = vector.load %arg5[%c0_9, %c0_10] : memref<4x16xbf16, #tpu.memory_space<vmem>>, vector<4x16xbf16>
    %cst_11 = arith.constant dense<0.000000e+00> : vector<128x16xf32>
    %17 = tpu.matmul %15, %16, %cst_11 {dimension_numbers = #tpu.dot_dimension_numbers<[1], [0], [0], [1], [0, 0, 1, 1], [], []>} : vector<128x4xbf16>, vector<4x16xbf16>, vector<128x16xf32> -> vector<128x16xf32>
    %c0_12 = arith.constant 0 : index
    %c0_13 = arith.constant 0 : index
    %c0_14 = arith.constant 0 : index
    %18 = vector.load %arg6[%c0_12, %c0_13, %c0_14] : memref<1x128x16xf32, #tpu.memory_space<vmem>>, vector<1x128x16xf32>
    %19 = vector.shape_cast %18 : vector<1x128x16xf32> to vector<128x16xf32>
    %20 = vector.shape_cast %17 : vector<128x16xf32> to vector<1x128x16xf32>
    tpu.vector_store %arg6[%c0_12, %c0_13, %c0_14], %20 {strides = array<i32>} : memref<1x128x16xf32, #tpu.memory_space<vmem>>, vector<1x128x16xf32>,
    %c0_15 = arith.constant 0 : index
    %c0_16 = arith.constant 0 : index
    %c0_17 = arith.constant 0 : index
    %21 = vector.load %arg7[%c0_15, %c0_16, %c0_17] : memref<1x1x16xf32, #tpu.memory_space<vmem>>, vector<1x1x16xf32>
    %22 = vector.shape_cast %21 : vector<1x1x16xf32> to vector<1x16xf32>
    %cst_18 = arith.constant dense<0.000000e+00> : vector<16xf32>
    %23 = vector.multi_reduction <add>, %17, %cst_18 [0] : vector<128x16xf32> to vector<16xf32>
    %24 = vector.shape_cast %23 : vector<16xf32> to vector<1x16xf32>
    %25 = arith.addf %22, %24 : vector<1x16xf32>
    %c0_19 = arith.constant 0 : index
    %c0_20 = arith.constant 0 : index
    %c0_21 = arith.constant 0 : index
    %26 = vector.load %arg7[%c0_19, %c0_20, %c0_21] : memref<1x1x16xf32, #tpu.memory_space<vmem>>, vector<1x1x16xf32>
    %27 = vector.shape_cast %26 : vector<1x1x16xf32> to vector<1x16xf32>
    %28 = vector.shape_cast %25 : vector<1x16xf32> to vector<1x1x16xf32>
    tpu.vector_store %arg7[%c0_19, %c0_20, %c0_21], %28 {strides = array<i32>} : memref<1x1x16xf32, #tpu.memory_space<vmem>>, vector<1x1x16xf32>,
    %c0_22 = arith.constant 0 : index
    %c0_23 = arith.constant 0 : index
    %c0_24 = arith.constant 0 : index
    %29 = vector.load %arg8[%c0_22, %c0_23, %c0_24] : memref<1x1x16xf32, #tpu.memory_space<vmem>>, vector<1x1x16xf32>
    %30 = vector.shape_cast %29 : vector<1x1x16xf32> to vector<1x16xf32>
    %31 = arith.mulf %17, %17 : vector<128x16xf32>
    %cst_25 = arith.constant dense<0.000000e+00> : vector<16xf32>
    %32 = vector.multi_reduction <add>, %31, %cst_25 [0] : vector<128x16xf32> to vector<16xf32>
    %33 = vector.shape_cast %32 : vector<16xf32> to vector<1x16xf32>
    %34 = arith.addf %30, %33 : vector<1x16xf32>
    %c0_26 = arith.constant 0 : index
    %c0_27 = arith.constant 0 : index
    %c0_28 = arith.constant 0 : index
    %35 = vector.load %arg8[%c0_26, %c0_27, %c0_28] : memref<1x1x16xf32, #tpu.memory_space<vmem>>, vector<1x1x16xf32>
    %36 = vector.shape_cast %35 : vector<1x1x16xf32> to vector<1x16xf32>
    %37 = vector.shape_cast %34 : vector<1x16xf32> to vector<1x1x16xf32>
    tpu.vector_store %arg8[%c0_26, %c0_27, %c0_28], %37 {strides = array<i32>} : memref<1x1x16xf32, #tpu.memory_space<vmem>>, vector<1x1x16xf32>,
    return
  }
  func.func @transform_0(%arg0: i32, %arg1: i32) -> (i32, i32, i32) {
    %c0_i32 = arith.constant 0 : i32
    %c0_i32_0 = arith.constant 0 : i32
    return %arg0, %arg1, %c0_i32 : i32, i32, i32
  }
  func.func @transform_1(%arg0: i32, %arg1: i32) -> (i32, i32, i32) {
    %c0_i32 = arith.constant 0 : i32
    %c0_i32_0 = arith.constant 0 : i32
    %c0_i32_1 = arith.constant 0 : i32
    return %arg0, %c0_i32, %c0_i32_0 : i32, i32, i32
  }
  func.func @transform_2(%arg0: i32, %arg1: i32) -> (i32, i32, i32) {
    %c0_i32 = arith.constant 0 : i32
    %c0_i32_0 = arith.constant 0 : i32
    %c0_i32_1 = arith.constant 0 : i32
    return %arg0, %c0_i32, %c0_i32_0 : i32, i32, i32
  }
  func.func @transform_3(%arg0: i32, %arg1: i32) -> (i32, i32) {
    %c0_i32 = arith.constant 0 : i32
    %c0_i32_0 = arith.constant 0 : i32
    %c0_i32_1 = arith.constant 0 : i32
    return %c0_i32, %c0_i32_0 : i32, i32
  }
  func.func @transform_4(%arg0: i32, %arg1: i32) -> (i32, i32, i32) {
    %c0_i32 = arith.constant 0 : i32
    %c0_i32_0 = arith.constant 0 : i32
    return %arg0, %arg1, %c0_i32 : i32, i32, i32
  }
  func.func @transform_5(%arg0: i32, %arg1: i32) -> (i32, i32, i32) {
    %c0_i32 = arith.constant 0 : i32
    %c0_i32_0 = arith.constant 0 : i32
    %c0_i32_1 = arith.constant 0 : i32
    return %arg0, %c0_i32, %c0_i32_0 : i32, i32, i32
  }
  func.func @transform_6(%arg0: i32, %arg1: i32) -> (i32, i32, i32) {
    %c0_i32 = arith.constant 0 : i32
    %c0_i32_0 = arith.constant 0 : i32
    %c0_i32_1 = arith.constant 0 : i32
    return %arg0, %c0_i32, %c0_i32_0 : i32, i32, i32
  }
}

module attributes {stable_mosaic.version = 11 : i64} {
  func.func @_conv3x3_stats_kernel(%arg0: i32, %arg1: i32, %arg2: memref<1x8x18x12xbf16, #tpu.memory_space<vmem>>, %arg3: memref<3x12x4xbf16, #tpu.memory_space<vmem>>, %arg4: memref<1x128x4xf32, #tpu.memory_space<vmem>>, %arg5: memref<1x1x4xf32, #tpu.memory_space<vmem>>, %arg6: memref<1x1x4xf32, #tpu.memory_space<vmem>>) attributes {dimension_semantics = [#tpu.dimension_semantics<parallel>, #tpu.dimension_semantics<arbitrary>], iteration_bounds = array<i64: 2, 2>, scalar_prefetch = 0 : i64, scratch_operands = 0 : i64, tpu.core_type = #tpu.core_type<tc>, window_params = [{transform_indices = @transform_0, window_bounds = array<i64: 1, 8, 18, 12>}, {pipeline_mode = #tpu.pipeline_mode<synchronous>, transform_indices = @transform_1, window_bounds = array<i64: 3, 12, 4>}, {transform_indices = @transform_2, window_bounds = array<i64: 1, 128, 4>}, {transform_indices = @transform_3, window_bounds = array<i64: 1, 1, 4>}, {transform_indices = @transform_4, window_bounds = array<i64: 1, 1, 4>}]} {
    %c0_i32 = arith.constant 0 : i32
    %0 = arith.cmpi eq, %arg1, %c0_i32 : i32
    %1 = arith.extui %0 : i1 to i32
    %c0_i32_0 = arith.constant 0 : i32
    %2 = arith.cmpi ne, %1, %c0_i32_0 : i32
    scf.if %2 {
      %cst_31 = arith.constant 0.000000e+00 : f32
      %44 = vector.broadcast %cst_31 : f32 to vector<1x1x4xf32>
      %c0_32 = arith.constant 0 : index
      %c0_33 = arith.constant 0 : index
      %c0_34 = arith.constant 0 : index
      %45 = vector.load %arg5[%c0_32, %c0_33, %c0_34] : memref<1x1x4xf32, #tpu.memory_space<vmem>>, vector<1x1x4xf32>
      tpu.vector_store %arg5[%c0_32, %c0_33, %c0_34], %44 {strides = array<i32>} : memref<1x1x4xf32, #tpu.memory_space<vmem>>, vector<1x1x4xf32>,
      %cst_35 = arith.constant 0.000000e+00 : f32
      %46 = vector.broadcast %cst_35 : f32 to vector<1x1x4xf32>
      %c0_36 = arith.constant 0 : index
      %c0_37 = arith.constant 0 : index
      %c0_38 = arith.constant 0 : index
      %47 = vector.load %arg6[%c0_36, %c0_37, %c0_38] : memref<1x1x4xf32, #tpu.memory_space<vmem>>, vector<1x1x4xf32>
      tpu.vector_store %arg6[%c0_36, %c0_37, %c0_38], %46 {strides = array<i32>} : memref<1x1x4xf32, #tpu.memory_space<vmem>>, vector<1x1x4xf32>,
    } else {
    }
    %c0 = arith.constant 0 : index
    %c0_1 = arith.constant 0 : index
    %c0_2 = arith.constant 0 : index
    %c0_3 = arith.constant 0 : index
    %3 = vector.load %arg2[%c0, %c0_1, %c0_2, %c0_3] : memref<1x8x18x12xbf16, #tpu.memory_space<vmem>>, vector<1x8x18x12xbf16>
    %4 = vector.shape_cast %3 : vector<1x8x18x12xbf16> to vector<8x18x12xbf16>
    %cst = arith.constant 0.000000e+00 : f32
    %5 = vector.broadcast %cst : f32 to vector<128x4xf32>
    %6 = vector.extract_strided_slice %4 {offsets = [0, 0, 0], sizes = [8, 16, 12], strides = [1, 1, 1]} : vector<8x18x12xbf16> to vector<8x16x12xbf16>
    %7 = vector.shape_cast %6 : vector<8x16x12xbf16> to vector<128x12xbf16>
    %c0_4 = arith.constant 0 : index
    %c0_5 = arith.constant 0 : index
    %c0_6 = arith.constant 0 : index
    %8 = vector.load %arg3[%c0_4, %c0_5, %c0_6] : memref<3x12x4xbf16, #tpu.memory_space<vmem>>, vector<1x12x4xbf16>
    %9 = vector.shape_cast %8 : vector<1x12x4xbf16> to vector<12x4xbf16>
    %cst_7 = arith.constant dense<0.000000e+00> : vector<128x4xf32>
    %10 = tpu.matmul %7, %9, %cst_7 {dimension_numbers = #tpu.dot_dimension_numbers<[1], [0], [0], [1], [0, 0, 1, 1], [], []>} : vector<128x12xbf16>, vector<12x4xbf16>, vector<128x4xf32> -> vector<128x4xf32>
    %11 = arith.addf %5, %10 : vector<128x4xf32>
    %12 = vector.extract_strided_slice %4 {offsets = [0, 1, 0], sizes = [8, 16, 12], strides = [1, 1, 1]} : vector<8x18x12xbf16> to vector<8x16x12xbf16>
    %13 = vector.shape_cast %12 : vector<8x16x12xbf16> to vector<128x12xbf16>
    %c1 = arith.constant 1 : index
    %c0_8 = arith.constant 0 : index
    %c0_9 = arith.constant 0 : index
    %14 = vector.load %arg3[%c1, %c0_8, %c0_9] : memref<3x12x4xbf16, #tpu.memory_space<vmem>>, vector<1x12x4xbf16>
    %15 = vector.shape_cast %14 : vector<1x12x4xbf16> to vector<12x4xbf16>
    %cst_10 = arith.constant dense<0.000000e+00> : vector<128x4xf32>
    %16 = tpu.matmul %13, %15, %cst_10 {dimension_numbers = #tpu.dot_dimension_numbers<[1], [0], [0], [1], [0, 0, 1, 1], [], []>} : vector<128x12xbf16>, vector<12x4xbf16>, vector<128x4xf32> -> vector<128x4xf32>
    %17 = arith.addf %11, %16 : vector<128x4xf32>
    %18 = vector.extract_strided_slice %4 {offsets = [0, 2, 0], sizes = [8, 16, 12], strides = [1, 1, 1]} : vector<8x18x12xbf16> to vector<8x16x12xbf16>
    %19 = vector.shape_cast %18 : vector<8x16x12xbf16> to vector<128x12xbf16>
    %c2 = arith.constant 2 : index
    %c0_11 = arith.constant 0 : index
    %c0_12 = arith.constant 0 : index
    %20 = vector.load %arg3[%c2, %c0_11, %c0_12] : memref<3x12x4xbf16, #tpu.memory_space<vmem>>, vector<1x12x4xbf16>
    %21 = vector.shape_cast %20 : vector<1x12x4xbf16> to vector<12x4xbf16>
    %cst_13 = arith.constant dense<0.000000e+00> : vector<128x4xf32>
    %22 = tpu.matmul %19, %21, %cst_13 {dimension_numbers = #tpu.dot_dimension_numbers<[1], [0], [0], [1], [0, 0, 1, 1], [], []>} : vector<128x12xbf16>, vector<12x4xbf16>, vector<128x4xf32> -> vector<128x4xf32>
    %23 = arith.addf %17, %22 : vector<128x4xf32>
    %c0_14 = arith.constant 0 : index
    %c0_15 = arith.constant 0 : index
    %c0_16 = arith.constant 0 : index
    %24 = vector.load %arg4[%c0_14, %c0_15, %c0_16] : memref<1x128x4xf32, #tpu.memory_space<vmem>>, vector<1x128x4xf32>
    %25 = vector.shape_cast %24 : vector<1x128x4xf32> to vector<128x4xf32>
    %26 = vector.shape_cast %23 : vector<128x4xf32> to vector<1x128x4xf32>
    tpu.vector_store %arg4[%c0_14, %c0_15, %c0_16], %26 {strides = array<i32>} : memref<1x128x4xf32, #tpu.memory_space<vmem>>, vector<1x128x4xf32>,
    %c0_17 = arith.constant 0 : index
    %c0_18 = arith.constant 0 : index
    %c0_19 = arith.constant 0 : index
    %27 = vector.load %arg5[%c0_17, %c0_18, %c0_19] : memref<1x1x4xf32, #tpu.memory_space<vmem>>, vector<1x1x4xf32>
    %28 = vector.shape_cast %27 : vector<1x1x4xf32> to vector<1x4xf32>
    %cst_20 = arith.constant dense<0.000000e+00> : vector<4xf32>
    %29 = vector.multi_reduction <add>, %23, %cst_20 [0] : vector<128x4xf32> to vector<4xf32>
    %30 = vector.shape_cast %29 : vector<4xf32> to vector<1x4xf32>
    %31 = arith.addf %28, %30 : vector<1x4xf32>
    %c0_21 = arith.constant 0 : index
    %c0_22 = arith.constant 0 : index
    %c0_23 = arith.constant 0 : index
    %32 = vector.load %arg5[%c0_21, %c0_22, %c0_23] : memref<1x1x4xf32, #tpu.memory_space<vmem>>, vector<1x1x4xf32>
    %33 = vector.shape_cast %32 : vector<1x1x4xf32> to vector<1x4xf32>
    %34 = vector.shape_cast %31 : vector<1x4xf32> to vector<1x1x4xf32>
    tpu.vector_store %arg5[%c0_21, %c0_22, %c0_23], %34 {strides = array<i32>} : memref<1x1x4xf32, #tpu.memory_space<vmem>>, vector<1x1x4xf32>,
    %c0_24 = arith.constant 0 : index
    %c0_25 = arith.constant 0 : index
    %c0_26 = arith.constant 0 : index
    %35 = vector.load %arg6[%c0_24, %c0_25, %c0_26] : memref<1x1x4xf32, #tpu.memory_space<vmem>>, vector<1x1x4xf32>
    %36 = vector.shape_cast %35 : vector<1x1x4xf32> to vector<1x4xf32>
    %37 = arith.mulf %23, %23 : vector<128x4xf32>
    %cst_27 = arith.constant dense<0.000000e+00> : vector<4xf32>
    %38 = vector.multi_reduction <add>, %37, %cst_27 [0] : vector<128x4xf32> to vector<4xf32>
    %39 = vector.shape_cast %38 : vector<4xf32> to vector<1x4xf32>
    %40 = arith.addf %36, %39 : vector<1x4xf32>
    %c0_28 = arith.constant 0 : index
    %c0_29 = arith.constant 0 : index
    %c0_30 = arith.constant 0 : index
    %41 = vector.load %arg6[%c0_28, %c0_29, %c0_30] : memref<1x1x4xf32, #tpu.memory_space<vmem>>, vector<1x1x4xf32>
    %42 = vector.shape_cast %41 : vector<1x1x4xf32> to vector<1x4xf32>
    %43 = vector.shape_cast %40 : vector<1x4xf32> to vector<1x1x4xf32>
    tpu.vector_store %arg6[%c0_28, %c0_29, %c0_30], %43 {strides = array<i32>} : memref<1x1x4xf32, #tpu.memory_space<vmem>>, vector<1x1x4xf32>,
    return
  }
  func.func @transform_0(%arg0: i32, %arg1: i32) -> (i32, i32, i32, i32) {
    %c0_i32 = arith.constant 0 : i32
    %c0_i32_0 = arith.constant 0 : i32
    %c0_i32_1 = arith.constant 0 : i32
    return %arg0, %arg1, %c0_i32, %c0_i32_0 : i32, i32, i32, i32
  }
  func.func @transform_1(%arg0: i32, %arg1: i32) -> (i32, i32, i32) {
    %c0_i32 = arith.constant 0 : i32
    %c0_i32_0 = arith.constant 0 : i32
    %c0_i32_1 = arith.constant 0 : i32
    %c0_i32_2 = arith.constant 0 : i32
    return %c0_i32, %c0_i32_0, %c0_i32_1 : i32, i32, i32
  }
  func.func @transform_2(%arg0: i32, %arg1: i32) -> (i32, i32, i32) {
    %c0_i32 = arith.constant 0 : i32
    %c0_i32_0 = arith.constant 0 : i32
    return %arg0, %arg1, %c0_i32 : i32, i32, i32
  }
  func.func @transform_3(%arg0: i32, %arg1: i32) -> (i32, i32, i32) {
    %c0_i32 = arith.constant 0 : i32
    %c0_i32_0 = arith.constant 0 : i32
    %c0_i32_1 = arith.constant 0 : i32
    return %arg0, %c0_i32, %c0_i32_0 : i32, i32, i32
  }
  func.func @transform_4(%arg0: i32, %arg1: i32) -> (i32, i32, i32) {
    %c0_i32 = arith.constant 0 : i32
    %c0_i32_0 = arith.constant 0 : i32
    %c0_i32_1 = arith.constant 0 : i32
    return %arg0, %c0_i32, %c0_i32_0 : i32, i32, i32
  }
}

module attributes {stable_mosaic.version = 11 : i64} {
  func.func @_affine_add_relu_kernel(%arg0: i32, %arg1: i32, %arg2: memref<1x128x16xf32, #tpu.memory_space<vmem>>, %arg3: memref<1x128x16xf32, #tpu.memory_space<vmem>>, %arg4: memref<1x1x16xf32, #tpu.memory_space<vmem>>, %arg5: memref<1x1x16xf32, #tpu.memory_space<vmem>>, %arg6: memref<1x128x16xf32, #tpu.memory_space<vmem>>) attributes {dimension_semantics = [#tpu.dimension_semantics<parallel>, #tpu.dimension_semantics<parallel>], iteration_bounds = array<i64: 2, 2>, scalar_prefetch = 0 : i64, scratch_operands = 0 : i64, tpu.core_type = #tpu.core_type<tc>, window_params = [{transform_indices = @transform_0, window_bounds = array<i64: 1, 128, 16>}, {transform_indices = @transform_1, window_bounds = array<i64: 1, 128, 16>}, {transform_indices = @transform_2, window_bounds = array<i64: 1, 1, 16>}, {transform_indices = @transform_3, window_bounds = array<i64: 1, 1, 16>}, {transform_indices = @transform_4, window_bounds = array<i64: 1, 128, 16>}]} {
    %c0 = arith.constant 0 : index
    %c0_0 = arith.constant 0 : index
    %c0_1 = arith.constant 0 : index
    %0 = vector.load %arg2[%c0, %c0_0, %c0_1] : memref<1x128x16xf32, #tpu.memory_space<vmem>>, vector<1x128x16xf32>
    %1 = vector.shape_cast %0 : vector<1x128x16xf32> to vector<128x16xf32>
    %c0_2 = arith.constant 0 : index
    %c0_3 = arith.constant 0 : index
    %c0_4 = arith.constant 0 : index
    %2 = vector.load %arg4[%c0_2, %c0_3, %c0_4] : memref<1x1x16xf32, #tpu.memory_space<vmem>>, vector<1x1x16xf32>
    %3 = vector.shape_cast %2 : vector<1x1x16xf32> to vector<1x16xf32>
    %4 = vector.broadcast %3 : vector<1x16xf32> to vector<128x16xf32>
    %5 = arith.mulf %1, %4 : vector<128x16xf32>
    %c0_5 = arith.constant 0 : index
    %c0_6 = arith.constant 0 : index
    %c0_7 = arith.constant 0 : index
    %6 = vector.load %arg5[%c0_5, %c0_6, %c0_7] : memref<1x1x16xf32, #tpu.memory_space<vmem>>, vector<1x1x16xf32>
    %7 = vector.shape_cast %6 : vector<1x1x16xf32> to vector<1x16xf32>
    %8 = vector.broadcast %7 : vector<1x16xf32> to vector<128x16xf32>
    %9 = arith.addf %5, %8 : vector<128x16xf32>
    %c0_8 = arith.constant 0 : index
    %c0_9 = arith.constant 0 : index
    %c0_10 = arith.constant 0 : index
    %10 = vector.load %arg3[%c0_8, %c0_9, %c0_10] : memref<1x128x16xf32, #tpu.memory_space<vmem>>, vector<1x128x16xf32>
    %11 = vector.shape_cast %10 : vector<1x128x16xf32> to vector<128x16xf32>
    %12 = arith.addf %9, %11 : vector<128x16xf32>
    %cst = arith.constant 0.000000e+00 : f32
    %13 = vector.broadcast %cst : f32 to vector<128x16xf32>
    %14 = arith.maximumf %12, %13 : vector<128x16xf32>
    %c0_11 = arith.constant 0 : index
    %c0_12 = arith.constant 0 : index
    %c0_13 = arith.constant 0 : index
    %15 = vector.load %arg6[%c0_11, %c0_12, %c0_13] : memref<1x128x16xf32, #tpu.memory_space<vmem>>, vector<1x128x16xf32>
    %16 = vector.shape_cast %15 : vector<1x128x16xf32> to vector<128x16xf32>
    %17 = vector.shape_cast %14 : vector<128x16xf32> to vector<1x128x16xf32>
    tpu.vector_store %arg6[%c0_11, %c0_12, %c0_13], %17 {strides = array<i32>} : memref<1x128x16xf32, #tpu.memory_space<vmem>>, vector<1x128x16xf32>,
    return
  }
  func.func @transform_0(%arg0: i32, %arg1: i32) -> (i32, i32, i32) {
    %c0_i32 = arith.constant 0 : i32
    %c0_i32_0 = arith.constant 0 : i32
    return %arg0, %arg1, %c0_i32 : i32, i32, i32
  }
  func.func @transform_1(%arg0: i32, %arg1: i32) -> (i32, i32, i32) {
    %c0_i32 = arith.constant 0 : i32
    %c0_i32_0 = arith.constant 0 : i32
    return %arg0, %arg1, %c0_i32 : i32, i32, i32
  }
  func.func @transform_2(%arg0: i32, %arg1: i32) -> (i32, i32, i32) {
    %c0_i32 = arith.constant 0 : i32
    %c0_i32_0 = arith.constant 0 : i32
    %c0_i32_1 = arith.constant 0 : i32
    return %arg0, %c0_i32, %c0_i32_0 : i32, i32, i32
  }
  func.func @transform_3(%arg0: i32, %arg1: i32) -> (i32, i32, i32) {
    %c0_i32 = arith.constant 0 : i32
    %c0_i32_0 = arith.constant 0 : i32
    %c0_i32_1 = arith.constant 0 : i32
    return %arg0, %c0_i32, %c0_i32_0 : i32, i32, i32
  }
  func.func @transform_4(%arg0: i32, %arg1: i32) -> (i32, i32, i32) {
    %c0_i32 = arith.constant 0 : i32
    %c0_i32_0 = arith.constant 0 : i32
    return %arg0, %arg1, %c0_i32 : i32, i32, i32
  }
}

</mosaic_0001>

<bundles_post_ra>
// kernel: bottleneck_forward.5
= control target key start
LH: loop header
LB: loop body
LE: loop exit
PB: predicated region body
PF: predicated region fallthrough
CT: control target
= control target key end

     0   :  { %s830_s15 = smov 0   ;;  %s832_s16 = smov 0   ;;  %s1004_s0 = inlined_call_operand.vmem [shape: f32[2,256,16], index: 0, kind: input, shape index: {}]   ;;  %s1005_s1 = inlined_call_operand.vmem [shape: bf16[16,4], index: 1, kind: input, shape index: {}]   ;;  %s1006_s2 = inlined_call_operand.vmem [shape: f32[2,256,4], index: 2, kind: output, shape index: {0}]   ;;  %s1007_s3 = inlined_call_operand.vmem [shape: f32[2,1,4], index: 3, kind: output, shape index: {1}]   ;;  %s1008_s4 = inlined_call_operand.vmem [shape: f32[2,1,4], index: 4, kind: output, shape index: {2}]  }
   0x1   :  { %s834_s17 = smov 0   ;;  %s836_s18 = smov 0  }
   0x2   :  { %s838_s19 = smov 0  }
   0x3 LB: > { %s24_s20 = sadd.s32 1, %s794_s17  ;;  %s27_s21 = sadd.s32 1, %s798_s18  ;;  %s802_s19 = sphi %s838_s19, %s15_s19   ;;  %s798_s18 = sphi %s836_s18, %s1012_s18   ;;  %s794_s17 = sphi %s834_s17, %s1011_s17   ;;  %s790_s16 = sphi %s832_s16, %s1010_s16   ;;  %s786_s15 = sphi %s830_s15, %s1009_s15  }
   0x4   : > { %p25_p0 = scmp.ge.s32.totalorder %s24_s20, 2  ;;  %p674_p1 = scmp.ge.s32.totalorder %s802_s19, 1 }
   0x5   : > { %p188_p2 = scmp.lt.s32.totalorder %s802_s19, 5 }
   0x6   : > { %s1014_s20 = smov (%p25_p0, %s24_s20), 0  ;;  %s1016_s21 = smov (!%p25_p0, %s27_s21), %s798_s18 }
   0x7   : > { %p189_p3 = pnand %p674_p1, %p188_p2  ;;  %p29_p4 = scmp.ge.s32.totalorder %s1016_s21, 2 }
   0x8   : > { %s675_s22 = sshll.u32 (!%p189_p3), %s786_s15, 4  ;;  %p229_p5 = scmp.lt.s32.totalorder (!%p189_p3), %s790_s16, 1 }
   0x9   : > { %s1018_s21 = smov (%p29_p4, %s1016_s21), 0  ;;  %192 = sbr.rel (%p189_p3) target bundleno = 294 (0x126), region = 28 }
   0xa   : > { %p231_p6 = scmp.lt.s32.totalorder (!%p189_p3), %s675_s22, 31  ;;  %p681_p7 = scmp.ne.s32.totalorder (!%p189_p3), %s786_s15, 0 }
  0x10   : > { %s1020_s16 = smov (!%p229_p5, %s790_s16), 1  ;;  %s1022_s22 = smov (!%p231_p6, %s675_s22), 31 }
  0x11   : > { %s676_s23 = sshll.u32 %s1020_s16, 5  ;;  %s863_s26 = scalar_lea.vmem %s1007_s3, %s1020_s16  ;;  %vm259_vm0 = vcmask (!%p681_p7), 24576   ;;  %v804_v0 = vmov (!%p681_p7), 0.0  }
  0x12   : > { %s234_s27 = sadd.s32 %s676_s23, %s1022_s22  ;;  %s868_s30 = scalar_lea.vmem %s1008_s4, %s1020_s16  ;;  %260 = vst.msk [vmem:[%s863_s26] sm:$0x1] (!%p681_p7), %vm259_vm0, %v804_v0 }
  0x13   : > { %s677_s5 = sshll.u32 %s234_s27, 3  ;;  %258 = sbr.rel (%p681_p7) target bundleno = 26 (0x1a), region = 32  ;;  %261 = vst.msk [vmem:[%s868_s30] sm:$0x1] (!%p681_p7), %vm259_vm0, %v804_v0 }
  0x14   : > { %s873_s8 = scalar_lea.vmem %s1004_s0, %s677_s5  ;;  %s878_s11 = scalar_lea.vmem %s1006_s2, %s677_s5 }
  0x1a PF: > { %v763_v1 = vld [vmem:[%s1005_s1] sm:$0xff]   ;;  %v263_v3 = vld [vmem:[%s873_s8 + $0x8] sm:$0xff]  ;;  %vm294_vm1 = vcmask 130048   ;;  %v264_v4 = vld [vmem:[%s873_s8 + $0x10] sm:$0xff]  ;;  %vm416_vm2 = vcmask 31744   ;;  %vm472_vm3 = vcmask 24576  }
  0x1b   : > { %v262_v2 = vld [vmem:[%s873_s8] sm:$0xff]  ;;  %702 = vmatprep.subr.bf16.mxu0 %v763_v1  ;;  %v265_v6 = vld [vmem:[%s873_s8 + $0x18] sm:$0xff]  ;;  %v267_v8 = vld [vmem:[%s873_s8 + $0x28] sm:$0xff]  ;;  %720 = vmatprep.subr.bf16.mxu1 %v763_v1 }
  0x1c   : > { %v278_v5 = vpack.c.bf16 %v263_v3, %v262_v2  ;;  %v266_v7 = vld [vmem:[%s873_s8 + $0x20] sm:$0xff]  ;;  %703 = vmatpush3.bf16.msra.mxu0 %v763_v1  ;;  %v279_v9 = vpack.c.bf16 %v265_v6, %v264_v4  ;;  %721 = vmatpush3.bf16.msra.mxu1 %v763_v1  ;;  %v271_v12 = vld [vmem:[%s873_s8 + $0x48] sm:$0xff]  ;;  %v272_v13 = vld [vmem:[%s873_s8 + $0x50] sm:$0xff] }
  0x1d   : > { %v280_v10 = vpack.c.bf16 %v267_v8, %v266_v7  ;;  %v270_v11 = vld [vmem:[%s873_s8 + $0x40] sm:$0xff]  ;;  %v273_v14 = vld [vmem:[%s873_s8 + $0x58] sm:$0xff]  ;;  %v275_v18 = vld [vmem:[%s873_s8 + $0x68] sm:$0xff] }
  0x1e   : > { %704 = vmatprep.mubr.msk.bf16.mxu0 %vm294_vm1, %v278_v5  ;;  %v282_v15 = vpack.c.bf16 %v271_v12, %v270_v11  ;;  %v283_v16 = vpack.c.bf16 %v273_v14, %v272_v13  ;;  %v274_v17 = vld [vmem:[%s873_s8 + $0x60] sm:$0xff]  ;;  %v268_v20 = vld [vmem:[%s873_s8 + $0x30] sm:$0xff]  ;;  %v269_v21 = vld [vmem:[%s873_s8 + $0x38] sm:$0xff] }
  0x1f   : > { %705 = vmatmul.mubr.msk.bf16.vlgmr.msra.gmra.mrb[0].mxu0 %vm294_vm1, %v279_v9  ;;  %v284_v19 = vpack.c.bf16 %v275_v18, %v274_v17  ;;  %v276_v22 = vld [vmem:[%s873_s8 + $0x70] sm:$0xff]  ;;  %v277_v23 = vld [vmem:[%s873_s8 + $0x78] sm:$0xff]  ;;  %v281_v24 = vpack.c.bf16 %v269_v21, %v268_v20 }
  0x20   : > { %708 = vmatprep.mubr.msk.bf16.mxu0 %vm294_vm1, %v280_v10  ;;  %712 = vmatprep.mubr.msk.bf16.mxu1 %vm294_vm1, %v282_v15  ;;  %v285_v25 = vpack.c.bf16 %v277_v23, %v276_v22 }
  0x21   : > { %713 = vmatmul.mubr.msk.bf16.vlgmr.msra.gmra.mrb[0].mxu1 %vm294_vm1, %v283_v16 }
  0x22   : > { %716 = vmatprep.mubr.msk.bf16.mxu1 %vm294_vm1, %v284_v19 }
  0x27   : > { %709 = vmatmul.mubr.msk.bf16.gmra.mrb[4].mxu0 %vm294_vm1, %v281_v24 }
  0x29   : > { %717 = vmatmul.mubr.msk.bf16.gmra.mrb[4].mxu1 %vm294_vm1, %v285_v25 }
  0xf2   : > { %v706_v26 = vpop.f32.mrb[0].mxu0 }
  0xf3   : > { %419 = vst.msk [vmem:[%s878_s11 + $0x10] sm:$0xff] %vm416_vm2, %v706_v26  ;;  %v353_v27 = vpop.f32.mrb[1].mxu0  ;;  %v477_v33 = vmul.f32 %v706_v26, %v706_v26  ;;  %v437_v40 = vsel %vm416_vm2, %v706_v26, 0.0 }
  0xf4   : > { %417 = vst.msk [vmem:[%s878_s11] sm:$0xff] %vm416_vm2, %v353_v27  ;;  %v475_v28 = vmul.f32 %v353_v27, %v353_v27  ;;  %v707_v29 = vpop.f32.mrb[2].mxu0  ;;  %v913_v30 = vpop.f32.mrb[0].mxu1  ;;  %v434_v34 = vsel %vm416_vm2, %v353_v27, 0.0 }
  0xf5   : > { %420 = vst.msk [vmem:[%s878_s11 + $0x18] sm:$0xff] %vm416_vm2, %v707_v29  ;;  %v356_v31 = vpop.f32.mrb[3].mxu0  ;;  %427 = vst.msk [vmem:[%s878_s11 + $0x50] sm:$0xff] %vm416_vm2, %v913_v30  ;;  %v385_v32 = vpop.f32.mrb[1].mxu1  ;;  %v478_v42 = vmul.f32 %v707_v29, %v707_v29  ;;  %v494_v46 = vsel %vm416_vm2, %v477_v33, 0.0  ;;  %v439_v47 = vsel %vm416_vm2, %v707_v29, 0.0  ;;  %v485_v21 = vmul.f32 %v913_v30, %v913_v30 }
  0xf6   : > { %418 = vst.msk [vmem:[%s878_s11 + $0x8] sm:$0xff] %vm416_vm2, %v356_v31  ;;  %v435_v35 = vsel %vm416_vm2, %v356_v31, 0.0  ;;  %v476_v36 = vmul.f32 %v356_v31, %v356_v31  ;;  %425 = vst.msk [vmem:[%s878_s11 + $0x40] sm:$0xff] %vm416_vm2, %v385_v32  ;;  %v926_v37 = vpop.f32.mrb[2].mxu1  ;;  %v491_v41 = vsel %vm416_vm2, %v475_v28, 0.0  ;;  %v483_v8 = vmul.f32 %v385_v32, %v385_v32 }
  0xf7   : > { %v436_v38 = vadd.f32 %v435_v35, %v434_v34  ;;  %428 = vst.msk [vmem:[%s878_s11 + $0x58] sm:$0xff] %vm416_vm2, %v926_v37  ;;  %v388_v39 = vpop.f32.mrb[3].mxu1  ;;  %v496_v52 = vsel %vm416_vm2, %v478_v42, 0.0  ;;  %v449_v13 = vsel %vm416_vm2, %v385_v32, 0.0  ;;  %v453_v25 = vsel %vm416_vm2, %v913_v30, 0.0 }
  0xf8   : > { %v492_v43 = vsel %vm416_vm2, %v476_v36, 0.0  ;;  %426 = vst.msk [vmem:[%s878_s11 + $0x48] sm:$0xff] %vm416_vm2, %v388_v39  ;;  %v506_v17 = vsel %vm416_vm2, %v483_v8, 0.0  ;;  %v484_v18 = vmul.f32 %v388_v39, %v388_v39  ;;  %v451_v22 = vsel %vm416_vm2, %v388_v39, 0.0 }
  0xf9   : > { %v438_v44 = vadd.f32 %v437_v40, %v436_v38  ;;  %v493_v45 = vadd.f32 %v492_v43, %v491_v41  ;;  %v486_v26 = vmul.f32 %v926_v37, %v926_v37  ;;  %v510_v32 = vsel %vm416_vm2, %v485_v21, 0.0 }
  0xfa   : > { %v710_v48 = vpop.f32.mrb[4].mxu0  ;;  %v508_v27 = vsel %vm416_vm2, %v484_v18, 0.0  ;;  %v455_v33 = vsel %vm416_vm2, %v926_v37, 0.0 }
  0xfb   : > { %v495_v49 = vadd.f32 %v494_v46, %v493_v45  ;;  %423 = vst.msk [vmem:[%s878_s11 + $0x30] sm:$0xff] %vm416_vm2, %v710_v48  ;;  %v369_v50 = vpop.f32.mrb[5].mxu0  ;;  %v440_v51 = vadd.f32 %v439_v47, %v438_v44  ;;  %v481_v61 = vmul.f32 %v710_v48, %v710_v48  ;;  %v445_v5 = vsel %vm416_vm2, %v710_v48, 0.0 }
  0xfc   : > { %421 = vst.msk [vmem:[%s878_s11 + $0x20] sm:$0xff] %vm416_vm2, %v369_v50  ;;  %v441_v53 = vsel %vm416_vm2, %v369_v50, 0.0  ;;  %v479_v54 = vmul.f32 %v369_v50, %v369_v50  ;;  %v711_v55 = vpop.f32.mrb[6].mxu0  ;;  %v718_v56 = vpop.f32.mrb[4].mxu1  ;;  %v512_v38 = vsel %vm416_vm2, %v486_v26, 0.0 }
  0xfd   : > { %v442_v57 = vadd.f32 %v441_v53, %v440_v51  ;;  %v497_v58 = vadd.f32 %v496_v52, %v495_v49  ;;  %424 = vst.msk [vmem:[%s878_s11 + $0x38] sm:$0xff] %vm416_vm2, %v711_v55  ;;  %v372_v59 = vpop.f32.mrb[7].mxu0  ;;  %431 = vst.msk [vmem:[%s878_s11 + $0x70] sm:$0xff] %vm416_vm2, %v718_v56  ;;  %v401_v60 = vpop.f32.mrb[5].mxu1  ;;  %v482_v6 = vmul.f32 %v711_v55, %v711_v55  ;;  %v502_v11 = vsel %vm416_vm2, %v481_v61, 0.0 }
  0xfe   : > { %v498_v62 = vsel %vm416_vm2, %v479_v54, 0.0  ;;  %422 = vst.msk [vmem:[%s878_s11 + $0x28] sm:$0xff] %vm416_vm2, %v372_v59  ;;  %v443_v63 = vsel %vm416_vm2, %v372_v59, 0.0  ;;  %v480_v0 = vmul.f32 %v372_v59, %v372_v59  ;;  %429 = vst.msk [vmem:[%s878_s11 + $0x60] sm:$0xff] %vm416_vm2, %v401_v60  ;;  %v719_v1 = vpop.f32.mrb[6].mxu1  ;;  %v447_v12 = vsel %vm416_vm2, %v711_v55, 0.0 }
  0xff   : > { %v499_v2 = vadd.f32 %v498_v62, %v497_v58  ;;  %v444_v3 = vadd.f32 %v443_v63, %v442_v57  ;;  %432 = vst.msk [vmem:[%s878_s11 + $0x78] sm:$0xff] %vm416_vm2, %v719_v1  ;;  %v404_v4 = vpop.f32.mrb[7].mxu1  ;;  %v504_v16 = vsel %vm416_vm2, %v482_v6, 0.0  ;;  %v487_v28 = vmul.f32 %v401_v60, %v401_v60 }
 0x100   : > { %v500_v7 = vsel %vm416_vm2, %v480_v0, 0.0  ;;  %430 = vst.msk [vmem:[%s878_s11 + $0x68] sm:$0xff] %vm416_vm2, %v404_v4  ;;  %v457_v34 = vsel %vm416_vm2, %v401_v60, 0.0  ;;  %v488_v39 = vmul.f32 %v404_v4, %v404_v4  ;;  %v489_v42 = vmul.f32 %v718_v56, %v718_v56 }
 0x101   : > { %v446_v9 = vadd.f32 %v445_v5, %v444_v3  ;;  %v501_v10 = vadd.f32 %v500_v7, %v499_v2  ;;  %v514_v30 = vsel %vm416_vm2, %v487_v28, 0.0  ;;  %v459_v43 = vsel %vm416_vm2, %v404_v4, 0.0  ;;  %v433_v2 = vld [vmem:[%s863_s26] sm:$0x1] }
 0x102   : > { %v461_v46 = vsel %vm416_vm2, %v718_v56, 0.0  ;;  %v490_v47 = vmul.f32 %v719_v1, %v719_v1  ;;  %v516_v37 = vsel %vm416_vm2, %v488_v39, 0.0  ;;  %v518_v50 = vsel %vm416_vm2, %v489_v42, 0.0  ;;  %v474_v4 = vld [vmem:[%s868_s30] sm:$0x1] }
 0x103   : > { %v503_v14 = vadd.f32 %v502_v11, %v501_v10  ;;  %v448_v15 = vadd.f32 %v447_v12, %v446_v9  ;;  %v463_v51 = vsel %vm416_vm2, %v719_v1, 0.0 }
 0x104   : > { %v520_v54 = vsel %vm416_vm2, %v490_v47, 0.0 }
 0x105   : > { %v450_v19 = vadd.f32 %v449_v13, %v448_v15  ;;  %v505_v20 = vadd.f32 %v504_v16, %v503_v14 }
 0x107   : > { %v507_v23 = vadd.f32 %v506_v17, %v505_v20  ;;  %v452_v24 = vadd.f32 %v451_v22, %v450_v19 }
 0x109   : > { %v454_v29 = vadd.f32 %v453_v25, %v452_v24  ;;  %v509_v31 = vadd.f32 %v508_v27, %v507_v23 }
 0x10b   : > { %v511_v35 = vadd.f32 %v510_v32, %v509_v31  ;;  %v456_v36 = vadd.f32 %v455_v33, %v454_v29 }
 0x10d   : > { %v458_v40 = vadd.f32 %v457_v34, %v456_v36  ;;  %v513_v41 = vadd.f32 %v512_v38, %v511_v35 }
 0x10f   : > { %v515_v44 = vadd.f32 %v514_v30, %v513_v41  ;;  %v460_v45 = vadd.f32 %v459_v43, %v458_v40 }
 0x111   : > { %v462_v48 = vadd.f32 %v461_v46, %v460_v45  ;;  %v517_v49 = vadd.f32 %v516_v37, %v515_v44 }
 0x113   : > { %v464_v52 = vadd.f32 %v463_v51, %v462_v48  ;;  %v519_v53 = vadd.f32 %v518_v50, %v517_v49 }
 0x115   : > { %v465_v55 = vrot.slane %v464_v52, 4  ;;  %v521_v57 = vadd.f32 %v520_v54, %v519_v53 }
 0x117   : > { %v466_v58 = vadd.f32 %v465_v55, %v464_v52  ;;  %v522_v56 = vrot.slane %v521_v57, 4 }
 0x119   : > { %v467_v59 = vrot.slane %v466_v58, 2  ;;  %v523_v60 = vadd.f32 %v522_v56, %v521_v57 }
 0x11b   : > { %v468_v61 = vadd.f32 %v467_v59, %v466_v58  ;;  %v524_v62 = vrot.slane %v523_v60, 2 }
 0x11d   : > { %v469_v63 = vrot.slane %v468_v61, 1  ;;  %v525_v0 = vadd.f32 %v524_v62, %v523_v60 }
 0x11f   : > { %v470_v3 = vadd.f32 %v469_v63, %v468_v61  ;;  %v526_v1 = vrot.slane %v525_v0, 1 }
 0x121   : > { %v471_v5 = vadd.f32 %v470_v3, %v433_v2  ;;  %v527_v6 = vadd.f32 %v526_v1, %v525_v0 }
 0x123   : > { %473 = vst.msk [vmem:[%s863_s26] sm:$0x1] %vm472_vm3, %v471_v5  ;;  %v528_v7 = vadd.f32 %v527_v6, %v474_v4 }
 0x125   : > { %529 = vst.msk [vmem:[%s868_s30] sm:$0x1] %vm472_vm3, %v528_v7 }
 0x126 PF: > { %s15_s19 = sadd.s32 1, %s802_s19   ;;  %s1009_s15 = smov %s794_s17 }
 0x127   : > { %p12_p8 = scmp.ge.s32.totalorder %s15_s19, 6   ;;  %s1010_s16 = smov %s798_s18 }
 0x128   : > { %s1011_s17 = smov %s1014_s20  ;;  %s1012_s18 = smov %s1018_s21 }
 0x129   :  { %14 = sbr.rel (!%p12_p8) target bundleno = 3 (0x3), region = 86 }

// kernel: bottleneck_forward.6
= control target key start
LH: loop header
LB: loop body
LE: loop exit
PB: predicated region body
PF: predicated region fallthrough
CT: control target
= control target key end

     0   :  { %s556_s12 = smov 0   ;;  %s558_s13 = smov 0   ;;  %s701_s0 = inlined_call_operand.vmem [shape: f32[2,256,4], index: 0, kind: input, shape index: {}]   ;;  %s702_s1 = inlined_call_operand.vmem [shape: f32[2,1,4], index: 1, kind: input, shape index: {}]   ;;  %s703_s2 = inlined_call_operand.vmem [shape: f32[2,1,4], index: 2, kind: input, shape index: {}]   ;;  %s704_s3 = inlined_call_operand.vmem [shape: f32[2,256,4], index: 3, kind: output, shape index: {}]  }
   0x1   :  { %s560_s14 = smov 0   ;;  %s562_s15 = smov 0  }
   0x2   :  { %s564_s16 = smov 0  }
   0x3 LB: > { %s22_s17 = sadd.s32 1, %s526_s14  ;;  %s25_s18 = sadd.s32 1, %s530_s15  ;;  %s534_s16 = sphi %s564_s16, %s13_s16   ;;  %s530_s15 = sphi %s562_s15, %s708_s15   ;;  %s526_s14 = sphi %s560_s14, %s707_s14   ;;  %s522_s13 = sphi %s558_s13, %s706_s13   ;;  %s518_s12 = sphi %s556_s12, %s705_s12  }
   0x4   : > { %p23_p0 = scmp.ge.s32.totalorder %s22_s17, 2  ;;  %p445_p1 = scmp.ge.s32.totalorder %s534_s16, 1 }
   0x5   : > { %p174_p2 = scmp.lt.s32.totalorder %s534_s16, 5 }
   0x6   : > { %s710_s17 = smov (%p23_p0, %s22_s17), 0  ;;  %s712_s18 = smov (!%p23_p0, %s25_s18), %s530_s15 }
   0x7   : > { %p175_p3 = pnand %p445_p1, %p174_p2  ;;  %p27_p4 = scmp.ge.s32.totalorder %s712_s18, 2 }
   0x8   : > { %s446_s19 = sshll.u32 (!%p175_p3), %s518_s12, 4  ;;  %p213_p5 = scmp.lt.s32.totalorder (!%p175_p3), %s522_s13, 1  ;;  %vm316_vm0 = vcmask (!%p175_p3), 31744  }
   0x9   : > { %s714_s18 = smov (%p27_p4, %s712_s18), 0  ;;  %178 = sbr.rel (%p175_p3) target bundleno = 39 (0x27), region = 32 }
   0xa   : > { %p215_p6 = scmp.lt.s32.totalorder (!%p175_p3), %s446_s19, 31 }
  0x10   : > { %s716_s13 = smov (!%p213_p5, %s522_s13), 1  ;;  %s718_s19 = smov (!%p215_p6, %s446_s19), 31 }
  0x11   : > { %s447_s20 = sshll.u32 %s716_s13, 5  ;;  %s224_s23 = scalar_lea.vmem %s702_s1, %s716_s13 }
  0x12   : > { %s218_s24 = sadd.s32 %s447_s20, %s718_s19  ;;  %s227_s27 = scalar_lea.vmem %s703_s2, %s716_s13  ;;  %v592_v0 = vld [vmem:[%s224_s23] ss:$0 sm:$0xff] }
  0x13   : > { %s448_s28 = sshll.u32 %s218_s24, 3  ;;  %v599_v1 = vld [vmem:[%s227_s27] ss:$0 sm:$0xff] }
  0x14   : > { %s597_s4 = scalar_lea.vmem %s701_s0, %s448_s28  ;;  %s622_s7 = scalar_lea.vmem %s704_s3, %s448_s28 }
  0x15   : > { %v238_v2 = vld [vmem:[%s597_s4] sm:$0xff]  ;;  %v239_v3 = vld [vmem:[%s597_s4 + $0x8] sm:$0xff]  ;;  %v240_v4 = vld [vmem:[%s597_s4 + $0x10] sm:$0xff] }
  0x16   : > { %v261_v5 = vmul.f32 %v592_v0, %v238_v2  ;;  %v262_v6 = vmul.f32 %v592_v0, %v239_v3  ;;  %v263_v7 = vmul.f32 %v592_v0, %v240_v4  ;;  %v241_v8 = vld [vmem:[%s597_s4 + $0x18] sm:$0xff]  ;;  %v242_v9 = vld [vmem:[%s597_s4 + $0x20] sm:$0xff]  ;;  %v243_v10 = vld [vmem:[%s597_s4 + $0x28] sm:$0xff] }
  0x17   : > { %v264_v11 = vmul.f32 %v592_v0, %v241_v8  ;;  %v265_v12 = vmul.f32 %v592_v0, %v242_v9  ;;  %v266_v13 = vmul.f32 %v592_v0, %v243_v10  ;;  %v244_v14 = vld [vmem:[%s597_s4 + $0x30] sm:$0xff]  ;;  %v245_v15 = vld [vmem:[%s597_s4 + $0x38] sm:$0xff]  ;;  %v246_v24 = vld [vmem:[%s597_s4 + $0x40] sm:$0xff] }
  0x18   : > { %v284_v16 = vadd.f32 %v599_v1, %v261_v5  ;;  %v285_v17 = vadd.f32 %v599_v1, %v262_v6  ;;  %v286_v18 = vadd.f32 %v599_v1, %v263_v7  ;;  %v267_v19 = vmul.f32 %v592_v0, %v244_v14  ;;  %v247_v25 = vld [vmem:[%s597_s4 + $0x48] sm:$0xff]  ;;  %v248_v26 = vld [vmem:[%s597_s4 + $0x50] sm:$0xff]  ;;  %v249_v31 = vld [vmem:[%s597_s4 + $0x58] sm:$0xff] }
  0x19   : > { %v287_v20 = vadd.f32 %v599_v1, %v264_v11  ;;  %v288_v21 = vadd.f32 %v599_v1, %v265_v12  ;;  %v289_v22 = vadd.f32 %v599_v1, %v266_v13  ;;  %v268_v23 = vmul.f32 %v592_v0, %v245_v15  ;;  %v250_v32 = vld [vmem:[%s597_s4 + $0x60] sm:$0xff]  ;;  %v251_v33 = vld [vmem:[%s597_s4 + $0x68] sm:$0xff]  ;;  %v252_v38 = vld [vmem:[%s597_s4 + $0x70] sm:$0xff] }
  0x1a   : > { %v300_v27 = vmax.f32 %v284_v16, 0.0  ;;  %v301_v28 = vmax.f32 %v285_v17, 0.0  ;;  %v302_v29 = vmax.f32 %v286_v18, 0.0  ;;  %v290_v30 = vadd.f32 %v599_v1, %v267_v19  ;;  %v253_v43 = vld [vmem:[%s597_s4 + $0x78] sm:$0xff] }
  0x1b   : > { %v303_v34 = vmax.f32 %v287_v20, 0.0  ;;  %v304_v35 = vmax.f32 %v288_v21, 0.0  ;;  %v305_v36 = vmax.f32 %v289_v22, 0.0  ;;  %v291_v37 = vadd.f32 %v599_v1, %v268_v23 }
  0x1c   : > { %317 = vst.msk [vmem:[%s622_s7] sm:$0xff] %vm316_vm0, %v300_v27  ;;  %318 = vst.msk [vmem:[%s622_s7 + $0x8] sm:$0xff] %vm316_vm0, %v301_v28  ;;  %v306_v39 = vmax.f32 %v290_v30, 0.0  ;;  %v269_v40 = vmul.f32 %v592_v0, %v246_v24  ;;  %v270_v41 = vmul.f32 %v592_v0, %v247_v25  ;;  %v271_v42 = vmul.f32 %v592_v0, %v248_v26 }
  0x1d   : > { %319 = vst.msk [vmem:[%s622_s7 + $0x10] sm:$0xff] %vm316_vm0, %v302_v29  ;;  %320 = vst.msk [vmem:[%s622_s7 + $0x18] sm:$0xff] %vm316_vm0, %v303_v34  ;;  %v307_v44 = vmax.f32 %v291_v37, 0.0  ;;  %v272_v45 = vmul.f32 %v592_v0, %v249_v31  ;;  %v273_v46 = vmul.f32 %v592_v0, %v250_v32  ;;  %v274_v47 = vmul.f32 %v592_v0, %v251_v33 }
  0x1e   : > { %321 = vst.msk [vmem:[%s622_s7 + $0x20] sm:$0xff] %vm316_vm0, %v304_v35  ;;  %322 = vst.msk [vmem:[%s622_s7 + $0x28] sm:$0xff] %vm316_vm0, %v305_v36  ;;  %v292_v48 = vadd.f32 %v599_v1, %v269_v40  ;;  %v293_v49 = vadd.f32 %v599_v1, %v270_v41  ;;  %v294_v50 = vadd.f32 %v599_v1, %v271_v42 }
  0x1f   : > { %323 = vst.msk [vmem:[%s622_s7 + $0x30] sm:$0xff] %vm316_vm0, %v306_v39  ;;  %v275_v51 = vmul.f32 %v592_v0, %v252_v38  ;;  %324 = vst.msk [vmem:[%s622_s7 + $0x38] sm:$0xff] %vm316_vm0, %v307_v44  ;;  %v295_v52 = vadd.f32 %v599_v1, %v272_v45  ;;  %v296_v53 = vadd.f32 %v599_v1, %v273_v46 }
  0x20   : > { %v297_v54 = vadd.f32 %v599_v1, %v274_v47  ;;  %v276_v55 = vmul.f32 %v592_v0, %v253_v43  ;;  %v308_v56 = vmax.f32 %v292_v48, 0.0  ;;  %v309_v57 = vmax.f32 %v293_v49, 0.0 }
  0x21   : > { %v310_v58 = vmax.f32 %v294_v50, 0.0  ;;  %v298_v59 = vadd.f32 %v599_v1, %v275_v51  ;;  %v311_v60 = vmax.f32 %v295_v52, 0.0  ;;  %v312_v61 = vmax.f32 %v296_v53, 0.0 }
  0x22   : > { %v313_v62 = vmax.f32 %v297_v54, 0.0  ;;  %v299_v63 = vadd.f32 %v599_v1, %v276_v55  ;;  %325 = vst.msk [vmem:[%s622_s7 + $0x40] sm:$0xff] %vm316_vm0, %v308_v56  ;;  %326 = vst.msk [vmem:[%s622_s7 + $0x48] sm:$0xff] %vm316_vm0, %v309_v57 }
  0x23   : > { %327 = vst.msk [vmem:[%s622_s7 + $0x50] sm:$0xff] %vm316_vm0, %v310_v58  ;;  %v314_v2 = vmax.f32 %v298_v59, 0.0  ;;  %328 = vst.msk [vmem:[%s622_s7 + $0x58] sm:$0xff] %vm316_vm0, %v311_v60 }
  0x24   : > { %329 = vst.msk [vmem:[%s622_s7 + $0x60] sm:$0xff] %vm316_vm0, %v312_v61  ;;  %330 = vst.msk [vmem:[%s622_s7 + $0x68] sm:$0xff] %vm316_vm0, %v313_v62  ;;  %v315_v0 = vmax.f32 %v299_v63, 0.0 }
  0x25   : > { %331 = vst.msk [vmem:[%s622_s7 + $0x70] sm:$0xff] %vm316_vm0, %v314_v2 }
  0x26   : > { %332 = vst.msk [vmem:[%s622_s7 + $0x78] sm:$0xff] %vm316_vm0, %v315_v0 }
  0x27 PF: > { %s13_s16 = sadd.s32 1, %s534_s16   ;;  %s705_s12 = smov %s526_s14 }
  0x28   : > { %p10_p7 = scmp.ge.s32.totalorder %s13_s16, 6   ;;  %s706_s13 = smov %s530_s15 }
  0x29   : > { %s707_s14 = smov %s710_s17  ;;  %s708_s15 = smov %s714_s18 }
  0x2a   :  { %12 = sbr.rel (!%p10_p7) target bundleno = 3 (0x3), region = 68 }

// kernel: bottleneck_forward.8
= control target key start
LH: loop header
LB: loop body
LE: loop exit
PB: predicated region body
PF: predicated region fallthrough
CT: control target
= control target key end

     0   :  { %s1001_s21 = smov 0   ;;  %s1003_s22 = smov 0   ;;  %s1209_s0 = inlined_call_operand.vmem [shape: f32[2,256,4], index: 0, kind: input, shape index: {}]   ;;  %s1210_s1 = inlined_call_operand.vmem [shape: f32[2,1,4], index: 1, kind: input, shape index: {}]   ;;  %s1211_s2 = inlined_call_operand.vmem [shape: f32[2,1,4], index: 2, kind: input, shape index: {}]   ;;  %s1212_s3 = inlined_call_operand.vmem [shape: bf16[4,16], index: 3, kind: input, shape index: {}]   ;;  %s1213_s4 = inlined_call_operand.vmem [shape: f32[2,256,16], index: 4, kind: output, shape index: {0}]   ;;  %s1214_s5 = inlined_call_operand.vmem [shape: f32[2,1,16], index: 5, kind: output, shape index: {1}]   ;;  %s1215_s6 = inlined_call_operand.vmem [shape: f32[2,1,16], index: 6, kind: output, shape index: {2}]  }
   0x1   :  { %s1005_s23 = smov 0   ;;  %s1007_s24 = smov 0  }
   0x2   :  { %s1009_s25 = smov 0  }
   0x3 LB: > { %s26_s26 = sadd.s32 1, %s955_s23  ;;  %s29_s27 = sadd.s32 1, %s959_s24  ;;  %s963_s25 = sphi %s1009_s25, %s17_s25   ;;  %s959_s24 = sphi %s1007_s24, %s1221_s24   ;;  %s955_s23 = sphi %s1005_s23, %s1220_s23   ;;  %s951_s22 = sphi %s1003_s22, %s1219_s22   ;;  %s947_s21 = sphi %s1001_s21, %s1218_s21  }
   0x4   : > { %p27_p0 = scmp.ge.s32.totalorder %s26_s26, 2  ;;  %p833_p1 = scmp.ge.s32.totalorder %s963_s25, 1 }
   0x5   : > { %p254_p2 = scmp.lt.s32.totalorder %s963_s25, 5 }
   0x6   : > { %s1223_s26 = smov (%p27_p0, %s26_s26), 0  ;;  %s1225_s27 = smov (!%p27_p0, %s29_s27), %s959_s24 }
   0x7   : > { %p255_p3 = pnand %p833_p1, %p254_p2  ;;  %p31_p4 = scmp.ge.s32.totalorder %s1225_s27, 2 }
   0x8   : > { %s834_s28 = sshll.u32 (!%p255_p3), %s947_s21, 4  ;;  %p305_p5 = scmp.lt.s32.totalorder (!%p255_p3), %s951_s22, 1 }
   0x9   : > { %s1227_s27 = smov (%p31_p4, %s1225_s27), 0  ;;  %258 = sbr.rel (%p255_p3) target bundleno = 303 (0x12f), region = 36 }
   0xa   : > { %1216 = sst [smem:[#allocation2_spill]] %s1227_s27  ;;  %p307_p6 = scmp.lt.s32.totalorder (!%p255_p3), %s834_s28, 31 }
   0xb   : > { %p840_p7 = scmp.ne.s32.totalorder (!%p255_p3), %s947_s21, 0 }
  0x10   : > { %s1229_s22 = smov (!%p305_p5, %s951_s22), 1  ;;  %s1231_s28 = smov (!%p307_p6, %s834_s28), 31 }
  0x11   : > { %s835_s29 = sshll.u32 %s1229_s22, 5  ;;  %s316_s8 = scalar_lea.vmem %s1210_s1, %s1229_s22  ;;  %vm341_vm0 = vcmask (!%p840_p7), 122880   ;;  %v965_v0 = vmov (!%p840_p7), 0.0  }
  0x12   : > { %s310_s9 = sadd.s32 %s835_s29, %s1231_s28  ;;  %s319_s12 = scalar_lea.vmem %s1211_s2, %s1229_s22 }
  0x13   : > { %s836_s13 = sshll.u32 %s310_s9, 3  ;;  %s1043_s16 = scalar_lea.vmem %s1214_s5, %s1229_s22 }
  0x14   : > { %s1048_s19 = scalar_lea.vmem %s1209_s0, %s836_s13  ;;  %s1053_s30 = scalar_lea.vmem %s1213_s4, %s836_s13  ;;  %342 = vst.msk [vmem:[%s1043_s16] sm:$0x1] (!%p840_p7), %vm341_vm0, %v965_v0 }
  0x15   : > { %s1058_s7 = scalar_lea.vmem %s1215_s6, %s1229_s22  ;;  %340 = sbr.rel (%p840_p7) target bundleno = 28 (0x1c), region = 40 }
  0x16   : > { %343 = vst.msk [vmem:[%s1058_s7] sm:$0x1] (!%p840_p7), %vm341_vm0, %v965_v0 }
  0x1c PF: > { %v430_v1 = vld [vmem:[%s1212_s3] sm:$0x3]  ;;  %vm456_vm1 = vcmask 1041408   ;;  %v345_v3 = vld [vmem:[%s1048_s19 + $0x8] sm:$0xff]  ;;  %v346_v7 = vld [vmem:[%s1048_s19 + $0x10] sm:$0xff]  ;;  %vm431_vm2 = vcmask 31744  }
  0x1d   : > { %v344_v2 = vld [vmem:[%s1048_s19] sm:$0xff]  ;;  %882 = vmatprep.subr.msk.bf16.mxu0 %vm456_vm1, %v430_v1  ;;  %v458_v4 = vsel %vm456_vm1, %v430_v1, 0  ;;  %883 = vmatprep.subr.msk.bf16.mxu1 %vm456_vm1, %v430_v1  ;;  %v347_v10 = vld [vmem:[%s1048_s19 + $0x18] sm:$0xff]  ;;  %v349_v13 = vld [vmem:[%s1048_s19 + $0x28] sm:$0xff]  ;;  %vm557_vm3 = vcmask 130048   ;;  %vm613_vm4 = vcmask 122880  }
  0x1e   : > { %v1068_v5 = vld [vmem:[%s316_s8] ss:$0 sm:$0xff]  ;;  %863 = vmatpush3.bf16.msra.mxu0 %v458_v4  ;;  %881 = vmatpush3.bf16.msra.mxu1 %v458_v4  ;;  %v350_v17 = vld [vmem:[%s1048_s19 + $0x30] sm:$0xff]  ;;  %v351_v18 = vld [vmem:[%s1048_s19 + $0x38] sm:$0xff] }
  0x1f   : > { %v1070_v6 = vld [vmem:[%s319_s12] ss:$0 sm:$0xff]  ;;  %v367_v8 = vmul.f32 %v1068_v5, %v344_v2  ;;  %v368_v9 = vmul.f32 %v1068_v5, %v345_v3  ;;  %v369_v11 = vmul.f32 %v1068_v5, %v346_v7  ;;  %v370_v14 = vmul.f32 %v1068_v5, %v347_v10  ;;  %v353_v28 = vld [vmem:[%s1048_s19 + $0x48] sm:$0xff]  ;;  %v354_v33 = vld [vmem:[%s1048_s19 + $0x50] sm:$0xff] }
  0x20   : > { %v348_v12 = vld [vmem:[%s1048_s19 + $0x20] sm:$0xff]  ;;  %v372_v16 = vmul.f32 %v1068_v5, %v349_v13  ;;  %v373_v22 = vmul.f32 %v1068_v5, %v350_v17  ;;  %v374_v26 = vmul.f32 %v1068_v5, %v351_v18  ;;  %v355_v38 = vld [vmem:[%s1048_s19 + $0x58] sm:$0xff]  ;;  %v376_v42 = vmul.f32 %v1068_v5, %v353_v28  ;;  %v357_v43 = vld [vmem:[%s1048_s19 + $0x68] sm:$0xff] }
  0x21   : > { %v371_v15 = vmul.f32 %v1068_v5, %v348_v12  ;;  %v390_v19 = vadd.f32 %v1070_v6, %v367_v8  ;;  %v391_v20 = vadd.f32 %v1070_v6, %v368_v9  ;;  %v392_v21 = vadd.f32 %v1070_v6, %v369_v11  ;;  %v352_v27 = vld [vmem:[%s1048_s19 + $0x40] sm:$0xff]  ;;  %v358_v44 = vld [vmem:[%s1048_s19 + $0x70] sm:$0xff]  ;;  %v359_v53 = vld [vmem:[%s1048_s19 + $0x78] sm:$0xff] }
  0x22   : > { %v393_v23 = vadd.f32 %v1070_v6, %v370_v14  ;;  %v395_v25 = vadd.f32 %v1070_v6, %v372_v16  ;;  %v396_v32 = vadd.f32 %v1070_v6, %v373_v22  ;;  %v397_v37 = vadd.f32 %v1070_v6, %v374_v26  ;;  %v356_v39 = vld [vmem:[%s1048_s19 + $0x60] sm:$0xff] }
  0x23   : > { %v394_v24 = vadd.f32 %v1070_v6, %v371_v15  ;;  %v406_v29 = vmax.f32 %v390_v19, 0.0  ;;  %v407_v30 = vmax.f32 %v391_v20, 0.0  ;;  %v408_v31 = vmax.f32 %v392_v21, 0.0 }
  0x24   : > { %v409_v34 = vmax.f32 %v393_v23, 0.0  ;;  %v411_v36 = vmax.f32 %v395_v25, 0.0  ;;  %v375_v41 = vmul.f32 %v1068_v5, %v352_v27  ;;  %v412_v47 = vmax.f32 %v396_v32, 0.0 }
  0x25   : > { %v410_v35 = vmax.f32 %v394_v24, 0.0  ;;  %v422_v40 = vpack.c.bf16 %v407_v30, %v406_v29  ;;  %v377_v48 = vmul.f32 %v1068_v5, %v354_v33  ;;  %v399_v50 = vadd.f32 %v1070_v6, %v376_v42 }
  0x26   : > { %v423_v45 = vpack.c.bf16 %v409_v34, %v408_v31  ;;  %v398_v49 = vadd.f32 %v1070_v6, %v375_v41  ;;  %v378_v51 = vmul.f32 %v1068_v5, %v355_v38  ;;  %v379_v52 = vmul.f32 %v1068_v5, %v356_v39 }
  0x27   : > { %v424_v46 = vpack.c.bf16 %v411_v36, %v410_v35  ;;  %864 = vmatprep.mubr.msk.bf16.mxu0 %vm431_vm2, %v422_v40  ;;  %v413_v54 = vmax.f32 %v397_v37, 0.0  ;;  %v400_v55 = vadd.f32 %v1070_v6, %v377_v48  ;;  %v380_v56 = vmul.f32 %v1068_v5, %v357_v43 }
  0x28   : > { %865 = vmatmul.mubr.msk.bf16.vlgmr.msra.gmra.mrb[0].mxu0 %vm431_vm2, %v423_v45  ;;  %v381_v57 = vmul.f32 %v1068_v5, %v358_v44  ;;  %v414_v58 = vmax.f32 %v398_v49, 0.0  ;;  %v415_v59 = vmax.f32 %v399_v50, 0.0  ;;  %v401_v60 = vadd.f32 %v1070_v6, %v378_v51 }
  0x29   : > { %868 = vmatprep.mubr.msk.bf16.mxu0 %vm431_vm2, %v424_v46  ;;  %v402_v61 = vadd.f32 %v1070_v6, %v379_v52  ;;  %v416_v62 = vmax.f32 %v400_v55, 0.0  ;;  %v403_v63 = vadd.f32 %v1070_v6, %v380_v56  ;;  %v382_v0 = vmul.f32 %v1068_v5, %v359_v53 }
  0x2a   : > { %v426_v1 = vpack.c.bf16 %v415_v59, %v414_v58  ;;  %v417_v2 = vmax.f32 %v401_v60, 0.0  ;;  %v404_v4 = vadd.f32 %v1070_v6, %v381_v57  ;;  %v425_v7 = vpack.c.bf16 %v413_v54, %v412_v47 }
  0x2b   : > { %v418_v3 = vmax.f32 %v402_v61, 0.0  ;;  %v419_v8 = vmax.f32 %v403_v63, 0.0  ;;  %v405_v9 = vadd.f32 %v1070_v6, %v382_v0 }
  0x2c   : > { %872 = vmatprep.mubr.msk.bf16.mxu1 %vm431_vm2, %v426_v1  ;;  %v427_v10 = vpack.c.bf16 %v417_v2, %v416_v62  ;;  %v420_v12 = vmax.f32 %v404_v4, 0.0 }
  0x2d   : > { %v428_v11 = vpack.c.bf16 %v419_v8, %v418_v3  ;;  %v421_v5 = vmax.f32 %v405_v9, 0.0 }
  0x2e   : > { %873 = vmatmul.mubr.msk.bf16.vlgmr.msra.gmra.mrb[0].mxu1 %vm431_vm2, %v427_v10 }
  0x2f   : > { %876 = vmatprep.mubr.msk.bf16.mxu1 %vm431_vm2, %v428_v11  ;;  %v429_v13 = vpack.c.bf16 %v421_v5, %v420_v12 }
  0x30   : > { %869 = vmatmul.mubr.msk.bf16.gmra.mrb[4].mxu0 %vm431_vm2, %v425_v7 }
  0x36   : > { %877 = vmatmul.mubr.msk.bf16.gmra.mrb[4].mxu1 %vm431_vm2, %v429_v13 }
  0xfb   : > { %v866_v14 = vpop.f32.mrb[0].mxu0 }
  0xfc   : > { %560 = vst.msk [vmem:[%s1053_s30 + $0x10] sm:$0xff] %vm557_vm3, %v866_v14  ;;  %v494_v6 = vpop.f32.mrb[1].mxu0  ;;  %v618_v18 = vmul.f32 %v866_v14, %v866_v14  ;;  %v578_v23 = vsel %vm557_vm3, %v866_v14, 0.0 }
  0xfd   : > { %558 = vst.msk [vmem:[%s1053_s30] sm:$0xff] %vm557_vm3, %v494_v6  ;;  %v616_v15 = vmul.f32 %v494_v6, %v494_v6  ;;  %v867_v16 = vpop.f32.mrb[2].mxu0  ;;  %v575_v19 = vsel %vm557_vm3, %v494_v6, 0.0 }
  0xfe   : > { %561 = vst.msk [vmem:[%s1053_s30 + $0x18] sm:$0xff] %vm557_vm3, %v867_v16  ;;  %v497_v17 = vpop.f32.mrb[3].mxu0  ;;  %v619_v25 = vmul.f32 %v867_v16, %v867_v16  ;;  %v635_v30 = vsel %vm557_vm3, %v618_v18, 0.0  ;;  %v580_v31 = vsel %vm557_vm3, %v867_v16, 0.0 }
  0xff   : > { %559 = vst.msk [vmem:[%s1053_s30 + $0x8] sm:$0xff] %vm557_vm3, %v497_v17  ;;  %v576_v20 = vsel %vm557_vm3, %v497_v17, 0.0  ;;  %v617_v21 = vmul.f32 %v497_v17, %v497_v17  ;;  %v632_v24 = vsel %vm557_vm3, %v616_v15, 0.0 }
 0x100   : > { %v577_v22 = vadd.f32 %v576_v20, %v575_v19  ;;  %v637_v38 = vsel %vm557_vm3, %v619_v25, 0.0 }
 0x101   : > { %v633_v26 = vsel %vm557_vm3, %v617_v21, 0.0  ;;  %v874_v29 = vpop.f32.mrb[0].mxu1 }
 0x102   : > { %v579_v27 = vadd.f32 %v578_v23, %v577_v22  ;;  %v634_v28 = vadd.f32 %v633_v26, %v632_v24  ;;  %568 = vst.msk [vmem:[%s1053_s30 + $0x50] sm:$0xff] %vm557_vm3, %v874_v29  ;;  %v526_v33 = vpop.f32.mrb[1].mxu1  ;;  %v626_v10 = vmul.f32 %v874_v29, %v874_v29  ;;  %v594_v13 = vsel %vm557_vm3, %v874_v29, 0.0 }
 0x103   : > { %v870_v32 = vpop.f32.mrb[4].mxu0  ;;  %566 = vst.msk [vmem:[%s1053_s30 + $0x40] sm:$0xff] %vm557_vm3, %v526_v33  ;;  %v875_v37 = vpop.f32.mrb[2].mxu1  ;;  %v624_v55 = vmul.f32 %v526_v33, %v526_v33  ;;  %v590_v61 = vsel %vm557_vm3, %v526_v33, 0.0 }
 0x104   : > { %v636_v34 = vadd.f32 %v635_v30, %v634_v28  ;;  %564 = vst.msk [vmem:[%s1053_s30 + $0x30] sm:$0xff] %vm557_vm3, %v870_v32  ;;  %v510_v35 = vpop.f32.mrb[5].mxu0  ;;  %v581_v36 = vadd.f32 %v580_v31, %v579_v27  ;;  %569 = vst.msk [vmem:[%s1053_s30 + $0x58] sm:$0xff] %vm557_vm3, %v875_v37  ;;  %v529_v42 = vpop.f32.mrb[3].mxu1  ;;  %v622_v46 = vmul.f32 %v870_v32, %v870_v32  ;;  %v586_v52 = vsel %vm557_vm3, %v870_v32, 0.0 }
 0x105   : > { %562 = vst.msk [vmem:[%s1053_s30 + $0x20] sm:$0xff] %vm557_vm3, %v510_v35  ;;  %v582_v39 = vsel %vm557_vm3, %v510_v35, 0.0  ;;  %v620_v40 = vmul.f32 %v510_v35, %v510_v35  ;;  %v871_v41 = vpop.f32.mrb[6].mxu0  ;;  %567 = vst.msk [vmem:[%s1053_s30 + $0x48] sm:$0xff] %vm557_vm3, %v529_v42  ;;  %v647_v3 = vsel %vm557_vm3, %v624_v55, 0.0  ;;  %v625_v4 = vmul.f32 %v529_v42, %v529_v42 }
 0x106   : > { %v583_v43 = vadd.f32 %v582_v39, %v581_v36  ;;  %v638_v44 = vadd.f32 %v637_v38, %v636_v34  ;;  %565 = vst.msk [vmem:[%s1053_s30 + $0x38] sm:$0xff] %vm557_vm3, %v871_v41  ;;  %v513_v45 = vpop.f32.mrb[7].mxu0  ;;  %v623_v53 = vmul.f32 %v871_v41, %v871_v41  ;;  %v643_v59 = vsel %vm557_vm3, %v622_v46, 0.0  ;;  %v615_v55 = vld [vmem:[%s1058_s7] sm:$0x1] }
 0x107   : > { %v639_v47 = vsel %vm557_vm3, %v620_v40, 0.0  ;;  %563 = vst.msk [vmem:[%s1053_s30 + $0x28] sm:$0xff] %vm557_vm3, %v513_v45  ;;  %v584_v48 = vsel %vm557_vm3, %v513_v45, 0.0  ;;  %v621_v49 = vmul.f32 %v513_v45, %v513_v45  ;;  %v588_v60 = vsel %vm557_vm3, %v871_v41, 0.0 }
 0x108   : > { %v640_v50 = vadd.f32 %v639_v47, %v638_v44  ;;  %v585_v51 = vadd.f32 %v584_v48, %v583_v43  ;;  %v645_v2 = vsel %vm557_vm3, %v623_v53, 0.0  ;;  %v592_v11 = vsel %vm557_vm3, %v529_v42, 0.0 }
 0x109   : > { %v641_v54 = vsel %vm557_vm3, %v621_v49, 0.0  ;;  %v878_v58 = vpop.f32.mrb[4].mxu1  ;;  %v627_v14 = vmul.f32 %v875_v37, %v875_v37  ;;  %v649_v6 = vsel %vm557_vm3, %v625_v4, 0.0  ;;  %v651_v18 = vsel %vm557_vm3, %v626_v10, 0.0 }
 0x10a   : > { %v587_v56 = vadd.f32 %v586_v52, %v585_v51  ;;  %v642_v57 = vadd.f32 %v641_v54, %v640_v50  ;;  %572 = vst.msk [vmem:[%s1053_s30 + $0x70] sm:$0xff] %vm557_vm3, %v878_v58  ;;  %v542_v62 = vpop.f32.mrb[5].mxu1  ;;  %v596_v19 = vsel %vm557_vm3, %v875_v37, 0.0  ;;  %v630_v28 = vmul.f32 %v878_v58, %v878_v58  ;;  %v574_v52 = vld [vmem:[%s1043_s16] sm:$0x1] }
 0x10b   : > { %570 = vst.msk [vmem:[%s1053_s30 + $0x60] sm:$0xff] %vm557_vm3, %v542_v62  ;;  %v879_v1 = vpop.f32.mrb[6].mxu1  ;;  %v628_v15 = vmul.f32 %v542_v62, %v542_v62  ;;  %v598_v20 = vsel %vm557_vm3, %v542_v62, 0.0  ;;  %v653_v23 = vsel %vm557_vm3, %v627_v14, 0.0  ;;  %v602_v32 = vsel %vm557_vm3, %v878_v58, 0.0 }
 0x10c   : > { %v644_v63 = vadd.f32 %v643_v59, %v642_v57  ;;  %v589_v0 = vadd.f32 %v588_v60, %v587_v56  ;;  %573 = vst.msk [vmem:[%s1053_s30 + $0x78] sm:$0xff] %vm557_vm3, %v879_v1  ;;  %v545_v7 = vpop.f32.mrb[7].mxu1  ;;  %v631_v33 = vmul.f32 %v879_v1, %v879_v1  ;;  %v659_v37 = vsel %vm557_vm3, %v630_v28, 0.0 }
 0x10d   : > { %571 = vst.msk [vmem:[%s1053_s30 + $0x68] sm:$0xff] %vm557_vm3, %v545_v7  ;;  %v655_v24 = vsel %vm557_vm3, %v628_v15, 0.0  ;;  %v629_v25 = vmul.f32 %v545_v7, %v545_v7  ;;  %v600_v29 = vsel %vm557_vm3, %v545_v7, 0.0  ;;  %v604_v38 = vsel %vm557_vm3, %v879_v1, 0.0 }
 0x10e   : > { %v591_v8 = vadd.f32 %v590_v61, %v589_v0  ;;  %v646_v9 = vadd.f32 %v645_v2, %v644_v63  ;;  %v661_v41 = vsel %vm557_vm3, %v631_v33, 0.0 }
 0x10f   : > { %v657_v34 = vsel %vm557_vm3, %v629_v25, 0.0 }
 0x110   : > { %v648_v12 = vadd.f32 %v647_v3, %v646_v9  ;;  %v593_v5 = vadd.f32 %v592_v11, %v591_v8 }
 0x112   : > { %v595_v16 = vadd.f32 %v594_v13, %v593_v5  ;;  %v650_v17 = vadd.f32 %v649_v6, %v648_v12 }
 0x114   : > { %v652_v21 = vadd.f32 %v651_v18, %v650_v17  ;;  %v597_v22 = vadd.f32 %v596_v19, %v595_v16 }
 0x116   : > { %v599_v26 = vadd.f32 %v598_v20, %v597_v22  ;;  %v654_v27 = vadd.f32 %v653_v23, %v652_v21 }
 0x118   : > { %v656_v30 = vadd.f32 %v655_v24, %v654_v27  ;;  %v601_v31 = vadd.f32 %v600_v29, %v599_v26 }
 0x11a   : > { %v603_v35 = vadd.f32 %v602_v32, %v601_v31  ;;  %v658_v36 = vadd.f32 %v657_v34, %v656_v30 }
 0x11c   : > { %v605_v39 = vadd.f32 %v604_v38, %v603_v35  ;;  %v660_v40 = vadd.f32 %v659_v37, %v658_v36 }
 0x11e   : > { %v606_v42 = vrot.slane %v605_v39, 4  ;;  %v662_v43 = vadd.f32 %v661_v41, %v660_v40 }
 0x120   : > { %v607_v44 = vadd.f32 %v606_v42, %v605_v39  ;;  %v663_v45 = vrot.slane %v662_v43, 4 }
 0x122   : > { %v608_v46 = vrot.slane %v607_v44, 2  ;;  %v664_v47 = vadd.f32 %v663_v45, %v662_v43 }
 0x124   : > { %v609_v48 = vadd.f32 %v608_v46, %v607_v44  ;;  %v665_v49 = vrot.slane %v664_v47, 2 }
 0x126   : > { %v610_v50 = vrot.slane %v609_v48, 1  ;;  %v666_v51 = vadd.f32 %v665_v49, %v664_v47 }
 0x128   : > { %v611_v53 = vadd.f32 %v610_v50, %v609_v48  ;;  %v667_v54 = vrot.slane %v666_v51, 1 }
 0x12a   : > { %v612_v56 = vadd.f32 %v611_v53, %v574_v52  ;;  %v668_v57 = vadd.f32 %v667_v54, %v666_v51 }
 0x12c   : > { %614 = vst.msk [vmem:[%s1043_s16] sm:$0x1] %vm613_vm4, %v612_v56  ;;  %v669_v58 = vadd.f32 %v668_v57, %v615_v55 }
 0x12e   : > { %670 = vst.msk [vmem:[%s1058_s7] sm:$0x1] %vm613_vm4, %v669_v58 }
 0x12f PF: > { %s17_s25 = sadd.s32 1, %s963_s25   ;;  %s1217_s27 = sld [smem:[#allocation2_spill]] }
 0x130   : > { %p14_p8 = scmp.ge.s32.totalorder %s17_s25, 6   ;;  %s1218_s21 = smov %s955_s23 }
 0x131   : > { %s1219_s22 = smov %s959_s24  ;;  %s1220_s23 = smov %s1223_s26 }
 0x132   :  { %16 = sbr.rel (!%p14_p8) target bundleno = 3 (0x3), region = 100 }
 0x135   : > { %s1221_s24 = smov %s1217_s27 }

// kernel: bottleneck_forward.9
= control target key start
LH: loop header
LB: loop body
LE: loop exit
PB: predicated region body
PF: predicated region fallthrough
CT: control target
= control target key end

     0   :  { %s677_s15 = smov 0   ;;  %s679_s16 = smov 0   ;;  %s812_s0 = inlined_call_operand.vmem [shape: f32[2,256,16], index: 0, kind: input, shape index: {}]   ;;  %s813_s1 = inlined_call_operand.vmem [shape: f32[2,256,16], index: 1, kind: input, shape index: {}, may-alias: {1,4}]   ;;  %s814_s2 = inlined_call_operand.vmem [shape: f32[2,1,16], index: 2, kind: input, shape index: {}]   ;;  %s815_s3 = inlined_call_operand.vmem [shape: f32[2,1,16], index: 3, kind: input, shape index: {}]   ;;  %s816_s4 = inlined_call_operand.vmem [shape: f32[2,256,16], index: 4, kind: output, shape index: {}, may-alias: {1,4}]  }
   0x1   :  { %s681_s17 = smov 0   ;;  %s683_s18 = smov 0  }
   0x2   :  { %s685_s19 = smov 0  }
   0x3 LB: > { %s23_s20 = sadd.s32 1, %s642_s17  ;;  %s26_s21 = sadd.s32 1, %s646_s18  ;;  %s650_s19 = sphi %s685_s19, %s14_s19   ;;  %s646_s18 = sphi %s683_s18, %s820_s18   ;;  %s642_s17 = sphi %s681_s17, %s819_s17   ;;  %s638_s16 = sphi %s679_s16, %s818_s16   ;;  %s634_s15 = sphi %s677_s15, %s817_s15  }
   0x4   : > { %p24_p0 = scmp.ge.s32.totalorder %s23_s20, 2  ;;  %p558_p1 = scmp.ge.s32.totalorder %s650_s19, 1 }
   0x5   : > { %p216_p2 = scmp.lt.s32.totalorder %s650_s19, 5 }
   0x6   : > { %s822_s20 = smov (%p24_p0, %s23_s20), 0  ;;  %s824_s21 = smov (!%p24_p0, %s26_s21), %s646_s18 }
   0x7   : > { %p217_p3 = pnand %p558_p1, %p216_p2  ;;  %p28_p4 = scmp.ge.s32.totalorder %s824_s21, 2 }
   0x8   : > { %s559_s22 = sshll.u32 (!%p217_p3), %s634_s15, 4  ;;  %p266_p5 = scmp.lt.s32.totalorder (!%p217_p3), %s638_s16, 1  ;;  %vm411_vm0 = vcmask (!%p217_p3), 130048  }
   0x9   : > { %s826_s21 = smov (%p28_p4, %s824_s21), 0  ;;  %220 = sbr.rel (%p217_p3) target bundleno = 44 (0x2c), region = 36 }
   0xa   : > { %p268_p6 = scmp.lt.s32.totalorder (!%p217_p3), %s559_s22, 31 }
  0x10   : > { %s828_s16 = smov (!%p266_p5, %s638_s16), 1  ;;  %s830_s22 = smov (!%p268_p6, %s559_s22), 31 }
  0x11   : > { %s560_s23 = sshll.u32 %s828_s16, 5  ;;  %s287_s26 = scalar_lea.vmem %s814_s2, %s828_s16 }
  0x12   : > { %s271_s27 = sadd.s32 %s560_s23, %s830_s22  ;;  %s290_s30 = scalar_lea.vmem %s815_s3, %s828_s16  ;;  %v568_v0 = vld [vmem:[%s287_s26] ss:$0 sm:$0xff] }
  0x13   : > { %s713_s5 = sshll.u32 %s271_s27, 3  ;;  %v569_v1 = vld [vmem:[%s290_s30] ss:$0 sm:$0xff] }
  0x14   : > { %s719_s8 = scalar_lea.vmem %s812_s0, %s713_s5  ;;  %s731_s11 = scalar_lea.vmem %s813_s1, %s713_s5 }
  0x15   : > { %v301_v2 = vld [vmem:[%s719_s8] sm:$0xff]  ;;  %v302_v3 = vld [vmem:[%s719_s8 + $0x8] sm:$0xff]  ;;  %v303_v4 = vld [vmem:[%s719_s8 + $0x10] sm:$0xff]  ;;  %s763_s14 = scalar_lea.vmem %s816_s4, %s713_s5 }
  0x16   : > { %v304_v5 = vld [vmem:[%s719_s8 + $0x18] sm:$0xff]  ;;  %v305_v6 = vld [vmem:[%s719_s8 + $0x20] sm:$0xff]  ;;  %v306_v7 = vld [vmem:[%s719_s8 + $0x28] sm:$0xff]  ;;  %v324_v8 = vmul.f32 %v568_v0, %v301_v2  ;;  %v325_v9 = vmul.f32 %v568_v0, %v302_v3  ;;  %v326_v10 = vmul.f32 %v568_v0, %v303_v4 }
  0x17   : > { %v307_v11 = vld [vmem:[%s719_s8 + $0x30] sm:$0xff]  ;;  %v308_v12 = vld [vmem:[%s719_s8 + $0x38] sm:$0xff]  ;;  %v309_v13 = vld [vmem:[%s719_s8 + $0x40] sm:$0xff]  ;;  %v327_v14 = vmul.f32 %v568_v0, %v304_v5  ;;  %v328_v15 = vmul.f32 %v568_v0, %v305_v6  ;;  %v329_v16 = vmul.f32 %v568_v0, %v306_v7 }
  0x18   : > { %v310_v17 = vld [vmem:[%s719_s8 + $0x48] sm:$0xff]  ;;  %v311_v18 = vld [vmem:[%s719_s8 + $0x50] sm:$0xff]  ;;  %v312_v19 = vld [vmem:[%s719_s8 + $0x58] sm:$0xff]  ;;  %v330_v20 = vmul.f32 %v568_v0, %v307_v11  ;;  %v331_v21 = vmul.f32 %v568_v0, %v308_v12  ;;  %v332_v22 = vmul.f32 %v568_v0, %v309_v13  ;;  %v347_v23 = vadd.f32 %v569_v1, %v324_v8 }
  0x19   : > { %v313_v24 = vld [vmem:[%s719_s8 + $0x60] sm:$0xff]  ;;  %v314_v25 = vld [vmem:[%s719_s8 + $0x68] sm:$0xff]  ;;  %v315_v26 = vld [vmem:[%s719_s8 + $0x70] sm:$0xff]  ;;  %v333_v27 = vmul.f32 %v568_v0, %v310_v17  ;;  %v334_v28 = vmul.f32 %v568_v0, %v311_v18  ;;  %v335_v29 = vmul.f32 %v568_v0, %v312_v19  ;;  %v348_v30 = vadd.f32 %v569_v1, %v325_v9 }
  0x1a   : > { %v316_v31 = vld [vmem:[%s719_s8 + $0x78] sm:$0xff]  ;;  %v336_v32 = vmul.f32 %v568_v0, %v313_v24  ;;  %v337_v33 = vmul.f32 %v568_v0, %v314_v25  ;;  %v338_v34 = vmul.f32 %v568_v0, %v315_v26  ;;  %v349_v35 = vadd.f32 %v569_v1, %v326_v10  ;;  %v363_v36 = vld [vmem:[%s731_s11] sm:$0xff]  ;;  %v364_v37 = vld [vmem:[%s731_s11 + $0x8] sm:$0xff] }
  0x1b   : > { %v339_v38 = vmul.f32 %v568_v0, %v316_v31  ;;  %v350_v39 = vadd.f32 %v569_v1, %v327_v14  ;;  %v351_v40 = vadd.f32 %v569_v1, %v328_v15  ;;  %v352_v41 = vadd.f32 %v569_v1, %v329_v16  ;;  %v365_v42 = vld [vmem:[%s731_s11 + $0x10] sm:$0xff]  ;;  %v366_v43 = vld [vmem:[%s731_s11 + $0x18] sm:$0xff]  ;;  %v367_v44 = vld [vmem:[%s731_s11 + $0x20] sm:$0xff] }
  0x1c   : > { %v353_v45 = vadd.f32 %v569_v1, %v330_v20  ;;  %v354_v46 = vadd.f32 %v569_v1, %v331_v21  ;;  %v355_v47 = vadd.f32 %v569_v1, %v332_v22  ;;  %v356_v48 = vadd.f32 %v569_v1, %v333_v27  ;;  %v368_v49 = vld [vmem:[%s731_s11 + $0x28] sm:$0xff]  ;;  %v369_v50 = vld [vmem:[%s731_s11 + $0x30] sm:$0xff]  ;;  %v370_v51 = vld [vmem:[%s731_s11 + $0x38] sm:$0xff] }
  0x1d   : > { %v357_v52 = vadd.f32 %v569_v1, %v334_v28  ;;  %v358_v53 = vadd.f32 %v569_v1, %v335_v29  ;;  %v359_v54 = vadd.f32 %v569_v1, %v336_v32  ;;  %v360_v55 = vadd.f32 %v569_v1, %v337_v33  ;;  %v371_v56 = vld [vmem:[%s731_s11 + $0x40] sm:$0xff]  ;;  %v372_v57 = vld [vmem:[%s731_s11 + $0x48] sm:$0xff]  ;;  %v373_v58 = vld [vmem:[%s731_s11 + $0x50] sm:$0xff] }
  0x1e   : > { %v361_v59 = vadd.f32 %v569_v1, %v338_v34  ;;  %v362_v60 = vadd.f32 %v569_v1, %v339_v38  ;;  %v374_v61 = vld [vmem:[%s731_s11 + $0x58] sm:$0xff]  ;;  %v375_v62 = vld [vmem:[%s731_s11 + $0x60] sm:$0xff]  ;;  %v376_v63 = vld [vmem:[%s731_s11 + $0x68] sm:$0xff]  ;;  %v379_v0 = vadd.f32 %v363_v36, %v347_v23  ;;  %v380_v2 = vadd.f32 %v364_v37, %v348_v30 }
  0x1f   : > { %v377_v3 = vld [vmem:[%s731_s11 + $0x70] sm:$0xff]  ;;  %v378_v4 = vld [vmem:[%s731_s11 + $0x78] sm:$0xff]  ;;  %v381_v5 = vadd.f32 %v365_v42, %v349_v35  ;;  %v382_v6 = vadd.f32 %v366_v43, %v350_v39  ;;  %v383_v7 = vadd.f32 %v367_v44, %v351_v40  ;;  %v384_v8 = vadd.f32 %v368_v49, %v352_v41 }
  0x20   : > { %v385_v9 = vadd.f32 %v369_v50, %v353_v45  ;;  %v386_v10 = vadd.f32 %v370_v51, %v354_v46  ;;  %v387_v11 = vadd.f32 %v371_v56, %v355_v47  ;;  %v388_v12 = vadd.f32 %v372_v57, %v356_v48 }
  0x21   : > { %v389_v1 = vadd.f32 %v373_v58, %v357_v52  ;;  %v390_v13 = vadd.f32 %v374_v61, %v358_v53  ;;  %v391_v14 = vadd.f32 %v375_v62, %v359_v54  ;;  %v392_v15 = vadd.f32 %v376_v63, %v360_v55 }
  0x22   : > { %v393_v16 = vadd.f32 %v377_v3, %v361_v59  ;;  %v394_v17 = vadd.f32 %v378_v4, %v362_v60  ;;  %v395_v18 = vmax.f32 %v379_v0, 0.0  ;;  %v396_v19 = vmax.f32 %v380_v2, 0.0 }
  0x23   : > { %v397_v20 = vmax.f32 %v381_v5, 0.0  ;;  %v398_v21 = vmax.f32 %v382_v6, 0.0  ;;  %v399_v22 = vmax.f32 %v383_v7, 0.0  ;;  %v400_v23 = vmax.f32 %v384_v8, 0.0 }
  0x24   : > { %v401_v24 = vmax.f32 %v385_v9, 0.0  ;;  %v402_v25 = vmax.f32 %v386_v10, 0.0  ;;  %v403_v26 = vmax.f32 %v387_v11, 0.0  ;;  %v404_v27 = vmax.f32 %v388_v12, 0.0  ;;  %412 = vst.msk [vmem:[%s763_s14] sm:$0xff] %vm411_vm0, %v395_v18  ;;  %413 = vst.msk [vmem:[%s763_s14 + $0x8] sm:$0xff] %vm411_vm0, %v396_v19 }
  0x25   : > { %v405_v28 = vmax.f32 %v389_v1, 0.0  ;;  %v406_v29 = vmax.f32 %v390_v13, 0.0  ;;  %v407_v30 = vmax.f32 %v391_v14, 0.0  ;;  %v408_v31 = vmax.f32 %v392_v15, 0.0  ;;  %414 = vst.msk [vmem:[%s763_s14 + $0x10] sm:$0xff] %vm411_vm0, %v397_v20  ;;  %415 = vst.msk [vmem:[%s763_s14 + $0x18] sm:$0xff] %vm411_vm0, %v398_v21 }
  0x26   : > { %416 = vst.msk [vmem:[%s763_s14 + $0x20] sm:$0xff] %vm411_vm0, %v399_v22  ;;  %417 = vst.msk [vmem:[%s763_s14 + $0x28] sm:$0xff] %vm411_vm0, %v400_v23  ;;  %v409_v32 = vmax.f32 %v393_v16, 0.0  ;;  %v410_v33 = vmax.f32 %v394_v17, 0.0 }
  0x27   : > { %418 = vst.msk [vmem:[%s763_s14 + $0x30] sm:$0xff] %vm411_vm0, %v401_v24  ;;  %419 = vst.msk [vmem:[%s763_s14 + $0x38] sm:$0xff] %vm411_vm0, %v402_v25 }
  0x28   : > { %420 = vst.msk [vmem:[%s763_s14 + $0x40] sm:$0xff] %vm411_vm0, %v403_v26  ;;  %421 = vst.msk [vmem:[%s763_s14 + $0x48] sm:$0xff] %vm411_vm0, %v404_v27 }
  0x29   : > { %422 = vst.msk [vmem:[%s763_s14 + $0x50] sm:$0xff] %vm411_vm0, %v405_v28  ;;  %423 = vst.msk [vmem:[%s763_s14 + $0x58] sm:$0xff] %vm411_vm0, %v406_v29 }
  0x2a   : > { %424 = vst.msk [vmem:[%s763_s14 + $0x60] sm:$0xff] %vm411_vm0, %v407_v30  ;;  %425 = vst.msk [vmem:[%s763_s14 + $0x68] sm:$0xff] %vm411_vm0, %v408_v31 }
  0x2b   : > { %426 = vst.msk [vmem:[%s763_s14 + $0x70] sm:$0xff] %vm411_vm0, %v409_v32  ;;  %427 = vst.msk [vmem:[%s763_s14 + $0x78] sm:$0xff] %vm411_vm0, %v410_v33 }
  0x2c PF: > { %s14_s19 = sadd.s32 1, %s650_s19   ;;  %s817_s15 = smov %s642_s17 }
  0x2d   : > { %p11_p7 = scmp.ge.s32.totalorder %s14_s19, 6   ;;  %s818_s16 = smov %s646_s18 }
  0x2e   : > { %s819_s17 = smov %s822_s20  ;;  %s820_s18 = smov %s826_s21 }
  0x2f   :  { %13 = sbr.rel (!%p11_p7) target bundleno = 3 (0x3), region = 75 }

// kernel: bottleneck_forward.7
= control target key start
LH: loop header
LB: loop body
LE: loop exit
PB: predicated region body
PF: predicated region fallthrough
CT: control target
= control target key end

     0   :  { %s1624_s15 = smov 0   ;;  %s1626_s16 = smov 0   ;;  %s2056_s0 = inlined_call_operand.vmem [shape: bf16[2,16,18,12], index: 0, kind: input, shape index: {}]   ;;  %s2057_s1 = inlined_call_operand.vmem [shape: bf16[3,12,4], index: 1, kind: input, shape index: {}]   ;;  %s2058_s2 = inlined_call_operand.vmem [shape: f32[2,256,4], index: 2, kind: output, shape index: {0}]   ;;  %s2059_s3 = inlined_call_operand.vmem [shape: f32[2,1,4], index: 3, kind: output, shape index: {1}]   ;;  %s2060_s4 = inlined_call_operand.vmem [shape: f32[2,1,4], index: 4, kind: output, shape index: {2}]  }
   0x1   :  { %s1628_s17 = smov 0   ;;  %s1630_s18 = smov 0  }
   0x2   :  { %s1632_s19 = smov 0  }
   0x3 LB: > { %s24_s20 = sadd.s32 1, %s1588_s17  ;;  %s27_s21 = sadd.s32 1, %s1592_s18  ;;  %s1596_s19 = sphi %s1632_s19, %s15_s19   ;;  %s1592_s18 = sphi %s1630_s18, %s2068_s18   ;;  %s1588_s17 = sphi %s1628_s17, %s2067_s17   ;;  %s1584_s16 = sphi %s1626_s16, %s2066_s16   ;;  %s1580_s15 = sphi %s1624_s15, %s2065_s15  }
   0x4   : > { %p25_p0 = scmp.ge.s32.totalorder %s24_s20, 2  ;;  %p1313_p1 = scmp.ge.s32.totalorder %s1596_s19, 1 }
   0x5   : > { %p189_p2 = scmp.lt.s32.totalorder %s1596_s19, 5 }
   0x6   : > { %s2070_s20 = smov (%p25_p0, %s24_s20), 0  ;;  %s2072_s21 = smov (!%p25_p0, %s27_s21), %s1592_s18 }
   0x7   : > { %p190_p3 = pnand %p1313_p1, %p189_p2  ;;  %p29_p4 = scmp.ge.s32.totalorder %s2072_s21, 2 }
   0x8   : > { %s1314_s22 = sshll.u32 (!%p190_p3), %s1580_s15, 3  ;;  %p231_p5 = scmp.lt.s32.totalorder (!%p190_p3), %s1584_s16, 1 }
   0x9   : > { %s2074_s21 = smov (%p29_p4, %s2072_s21), 0  ;;  %193 = sbr.rel (%p190_p3) target bundleno = 338 (0x152), region = 28 }
   0xa   : > { %p233_p6 = scmp.lt.s32.totalorder (!%p190_p3), %s1314_s22, 15  ;;  %s1316_s23 = sshll.u32 (!%p190_p3), %s1580_s15, 4 }
   0xb   : > { %p244_p7 = scmp.lt.s32.totalorder (!%p190_p3), %s1316_s23, 31  ;;  %p1319_p8 = scmp.ne.s32.totalorder (!%p190_p3), %s1580_s15, 0 }
  0x10   : > { %s2076_s16 = smov (!%p231_p5, %s1584_s16), 1  ;;  %s2078_s22 = smov (!%p233_p6, %s1314_s22), 15 }
  0x11   : > { %s1505_s24 = smul.u32 48, %s2076_s16  ;;  %s1317_s26 = sshll.u32 %s2076_s16, 5  ;;  %vm262_vm0 = vcmask (!%p1319_p8), 24576   ;;  %v1598_v0 = vmov (!%p1319_p8), 0.0  }
  0x12   : > { %s1504_s25 = smul.u32 3, %s2078_s22  ;;  %s2080_s23 = smov (!%p244_p7, %s1316_s23), 31 }
  0x13   : > { %s1661_s30 = scalar_lea.vmem %s2059_s3, %s2076_s16  ;;  %s247_s6 = sadd.s32 %s1317_s26, %s2080_s23 }
  0x14   : > { %s237_s27 = sadd.s32 %s1505_s24, %s1504_s25  ;;  %s1318_s10 = sshll.u32 %s247_s6, 3  ;;  %263 = vst.msk [vmem:[%s1661_s30] sm:$0x1] (!%p1319_p8), %vm262_vm0, %v1598_v0 }
  0x15   : > { %s1315_s5 = sshll.u32 %s237_s27, 2  ;;  %s1671_s13 = scalar_lea.vmem %s2058_s2, %s1318_s10 }
  0x16   : > { %s1666_s9 = scalar_lea.vmem %s2056_s0, %s1315_s5  ;;  %s1676_s24 = scalar_lea.vmem %s2060_s4, %s2076_s16 }
  0x17   : > { %261 = sbr.rel (%p1319_p8) target bundleno = 30 (0x1e), region = 32  ;;  %264 = vst.msk [vmem:[%s1676_s24] sm:$0x1] (!%p1319_p8), %vm262_vm0, %v1598_v0 }
  0x1e PF: > { %vm543_vm1 = vcmask 1045504   ;;  %vm518_vm2 = vcmask 97280   ;;  %v1547_v1 = vld [vmem:[%s2057_s1] sm:$0x3f]   ;;  %v1696_v8 = vld [vmem:[%s1666_s9 + $0xc] sm:$0xf] }
  0x1f   : > { %v1685_v2 = vld [vmem:[%s1666_s9] sm:$0xf]  ;;  %v1688_v3 = vld [vmem:[%s1666_s9 + $0x4] sm:$0xf]  ;;  %1501 = vmatprep.subr.msk.bf16.mxu0 %vm543_vm1, %v1547_v1  ;;  %v1700_v9 = vsel %vm543_vm1, %v1547_v1, 0  ;;  %v319_v13 = vshrl.u32 %v1696_v8, 16 }
  0x20   : > { %v295_v4 = vshrl.u32 %v1685_v2, 16  ;;  %v298_v5 = vshll.u32 %v1685_v2, 16  ;;  %v308_v6 = vshrl.u32 %v1688_v3, 16  ;;  %v1339_v7 = vcombine.low %v1685_v2, %v1688_v3  ;;  %v1705_v12 = vld [vmem:[%s1666_s9 + $0x10] sm:$0xf]  ;;  %1431 = vmatpush3.bf16.msra.mxu0 %v1700_v9 }
  0x21   : > { %v1356_v10 = vrot.slane %v1685_v2, 9  ;;  %v826_v11 = vrot.slane %v1688_v3, 5  ;;  %v322_v14 = vshll.u32 %v1696_v8, 16  ;;  %v332_v15 = vshrl.u32 %v1705_v12, 16  ;;  %v1550_v20 = vld [vmem:[%s2057_s1 + $0x8] sm:$0x3f]  }
  0x22   : > { %1432 = vmatprep.mubr.msk.bf16.mxu0 %vm518_vm2, %v1339_v7  ;;  %v1340_v16 = vcombine.low %v1696_v8, %v1705_v12  ;;  %v1357_v17 = vrot.slane %v1696_v8, 9  ;;  %v833_v19 = vrot.slane %v1705_v12, 5  ;;  %v1724_v21 = vld [vmem:[%s1666_s9 + $0x8] sm:$0x1]  ;;  %vm291_vm3 = vsmask.f32 3328  ;;  %1500 = vmatprep.subr.msk.bf16.mxu1 %vm543_vm1, %v1550_v20 }
  0x23   : > { %v1717_v18 = vrot.slane %v826_v11, 4  ;;  %vm292_vm4 = vsmask.f32 7440  ;;  %v545_v23 = vsel %vm543_vm1, %v1550_v20, 0  ;;  %v297_v24 = vrot.slane %v295_v4, 4 }
  0x24   : > { %1433 = vmatmul.mubr.msk.bf16.vlgmr.msra.gmra.mrb[0].mxu0 %vm518_vm2, %v1340_v16  ;;  %v1729_v22 = vrot.slane %v833_v19, 4  ;;  %v300_v25 = vrot.slane %v298_v5, 5  ;;  %1413 = vmatpush3.bf16.msra.mxu1 %v545_v23  ;;  %v304_v26 = vshll.u32 %v1688_v3, 16  ;;  %v310_v27 = vrot.slane %v308_v6, 4  ;;  %v1551_v31 = vld [vmem:[%s2057_s1 + $0x10] sm:$0x3f]   ;;  %vm1745_vm5 = vmor %vm291_vm3, %vm292_vm4 }
  0x25   : > { %v314_v28 = vshll.u32 %v1724_v21, 16  ;;  %v829_v29 = vrot.slane %v1724_v21, 5  ;;  %1502 = vmatprep.subr.msk.bf16.mxu1 %vm543_vm1, %v1547_v1  ;;  %v1741_v32 = vld [vmem:[%s1666_s9 + $0x14] sm:$0x1]  ;;  %v321_v33 = vrot.slane %v319_v13, 4  ;;  %v324_v34 = vrot.slane %v322_v14, 5  ;;  %1503 = vmatprep.subr.msk.bf16.mxu0 %vm543_vm1, %v1551_v31 }
  0x26   : > { %v301_v30 = vor.u32 %v300_v25, %v297_v24  ;;  %v306_v36 = vrot.slane %v304_v26, 5  ;;  %v328_v38 = vshll.u32 %v1705_v12, 16  ;;  %v334_v39 = vrot.slane %v332_v15, 4  ;;  %v1751_v40 = vld [vmem:[%s1666_s9 + $0x18] sm:$0xf] }
  0x27   : > { %v316_v37 = vrot.slane %v314_v28, 5  ;;  %v325_v42 = vor.u32 %v324_v34, %v321_v33  ;;  %v338_v43 = vshll.u32 %v1741_v32, 16  ;;  %v836_v44 = vrot.slane %v1741_v32, 5  ;;  %v1757_v45 = vld [vmem:[%s1666_s9 + $0x1c] sm:$0xf] }
  0x28   : > { %v302_v41 = vrot.slane %v301_v30, 4  ;;  %v311_v46 = vor.u32 %v310_v27, %v306_v36  ;;  %v330_v47 = vrot.slane %v328_v38, 5  ;;  %v937_v48 = vsel %vm543_vm1, %v1551_v31, 0  ;;  %v1762_v50 = vld [vmem:[%s1666_s9 + $0x24] sm:$0xf] }
  0x29   : > { %v343_v49 = vshrl.u32 %v1751_v40, 16  ;;  %v326_v52 = vrot.slane %v325_v42, 4  ;;  %v340_v53 = vrot.slane %v338_v43, 5  ;;  %1449 = vmatpush3.bf16.msra.mxu0 %v937_v48  ;;  %v346_v54 = vshll.u32 %v1751_v40, 16  ;;  %v1768_v55 = vld [vmem:[%s1666_s9 + $0x28] sm:$0xf] }
  0x2a   : > { %v307_v51 = vsel %vm1745_vm5, %v302_v41, %v306_v36  ;;  %v312_v56 = vrot.slane %v311_v46, 4  ;;  %v335_v57 = vor.u32 %v334_v39, %v330_v47  ;;  %v356_v58 = vshrl.u32 %v1757_v45, 16  ;;  %v1779_v0 = vld [vmem:[%s1666_s9 + $0x20] sm:$0x1]  ;;  %v1788_v16 = vld [vmem:[%s1666_s9 + $0x2c] sm:$0x1] }
  0x2b   : > { %v1341_v59 = vcombine.low %v1751_v40, %v1757_v45  ;;  %v331_v60 = vsel %vm1745_vm5, %v326_v52, %v330_v47  ;;  %v367_v61 = vshrl.u32 %v1762_v50, 16  ;;  %v370_v62 = vshll.u32 %v1762_v50, 16  ;;  %v1797_v31 = vld [vmem:[%s1666_s9 + $0x30] sm:$0xf]  ;;  %v1833_v3 = vld [vmem:[%s1666_s9 + $0x38] sm:$0x1] }
  0x2c   : > { %v380_v63 = vshrl.u32 %v1768_v55, 16  ;;  %v317_v1 = vsel %vm1745_vm5, %v312_v56, %v316_v37  ;;  %v336_v4 = vrot.slane %v335_v57, 4  ;;  %v1342_v5 = vcombine.low %v1762_v50, %v1768_v55  ;;  %v1830_v57 = vld [vmem:[%s1666_s9 + $0x34] sm:$0xf]  ;;  %v1843_v8 = vld [vmem:[%s1666_s9 + $0x3c] sm:$0xf] }
  0x2d   : > { %1436 = vmatprep.mubr.msk.bf16.mxu0 %vm518_vm2, %v1341_v59  ;;  %v345_v6 = vrot.slane %v343_v49, 4  ;;  %v1322_v7 = vcombine.low %v307_v51, %v317_v1  ;;  %v348_v13 = vrot.slane %v346_v54, 5  ;;  %v352_v14 = vshll.u32 %v1757_v45, 16 }
  0x2e   : > { %v358_v15 = vrot.slane %v356_v58, 4  ;;  %v341_v20 = vsel %vm1745_vm5, %v336_v4, %v340_v53  ;;  %1437 = vmatmul.mubr.msk.bf16.gmra.mrb[4].mxu0 %vm518_vm2, %v1342_v5  ;;  %v362_v23 = vshll.u32 %v1779_v0, 16  ;;  %v369_v24 = vrot.slane %v367_v61, 4  ;;  %v1857_v61 = vld [vmem:[%s1666_s9 + $0x44] sm:$0x1] }
  0x2f   : > { %v372_v25 = vrot.slane %v370_v62, 5  ;;  %1414 = vmatprep.mubr.msk.bf16.mxu1 %vm518_vm2, %v1322_v7  ;;  %v1323_v26 = vcombine.low %v331_v60, %v341_v20  ;;  %v349_v27 = vor.u32 %v348_v13, %v345_v6  ;;  %v354_v28 = vrot.slane %v352_v14, 5 }
  0x30   : > { %v376_v30 = vshll.u32 %v1768_v55, 16  ;;  %v364_v33 = vrot.slane %v362_v23, 5  ;;  %v382_v36 = vrot.slane %v380_v63, 4  ;;  %v386_v37 = vshll.u32 %v1788_v16, 16 }
  0x31   : > { %v373_v34 = vor.u32 %v372_v25, %v369_v24  ;;  %1415 = vmatmul.mubr.msk.bf16.vlgmr.msra.gmra.mrb[0].mxu1 %vm518_vm2, %v1323_v26  ;;  %v350_v38 = vrot.slane %v349_v27, 4  ;;  %v359_v39 = vor.u32 %v358_v15, %v354_v28  ;;  %vm821_vm6 = vcmask 1042432  }
  0x32   : > { %v378_v41 = vrot.slane %v376_v30, 5  ;;  %1467 = vmatpush3.bf16.msra.mxu1 %v1700_v9  ;;  %v388_v43 = vrot.slane %v386_v37, 5  ;;  %vm822_vm7 = vcmask 1046532   ;;  %v391_v46 = vshrl.u32 %v1797_v31, 16 }
  0x33   : > { %v374_v42 = vrot.slane %v373_v34, 4  ;;  %v355_v47 = vsel %vm1745_vm5, %v350_v38, %v354_v28  ;;  %v360_v48 = vrot.slane %v359_v39, 4  ;;  %vm1805_vm8 = vmor %vm821_vm6, %vm822_vm7  ;;  %v394_v52 = vshll.u32 %v1797_v31, 16 }
  0x34   : > { %v383_v49 = vor.u32 %v382_v36, %v378_v41  ;;  %v827_v53 = vsel %vm1805_vm8, %v1356_v10, %v826_v11  ;;  %v830_v54 = vsel %vm1805_vm8, %v1717_v18, %v829_v29  ;;  %v834_v56 = vsel %vm1805_vm8, %v1357_v17, %v833_v19  ;;  %v1846_v29 = vld [vmem:[%s1666_s9 + $0x40] sm:$0xf] }
  0x35   : > { %v379_v9 = vsel %vm1745_vm5, %v374_v42, %v378_v41  ;;  %v365_v2 = vsel %vm1745_vm5, %v360_v48, %v364_v33  ;;  %v1366_v11 = vcombine.low %v827_v53, %v830_v54  ;;  %v837_v12 = vsel %vm1805_vm8, %v1729_v22, %v836_v44  ;;  %v1870_v33 = vld [vmem:[%s1666_s9 + $0x48] sm:$0xf]  ;;  %v1892_v53 = vld [vmem:[%s1666_s9 + $0x54] sm:$0xf] }
  0x36   : > { %v384_v10 = vrot.slane %v383_v49, 4  ;;  %v1324_v18 = vcombine.low %v355_v47, %v365_v2  ;;  %v1367_v17 = vcombine.low %v834_v56, %v837_v12  ;;  %v393_v19 = vrot.slane %v391_v46, 4  ;;  %v1881_v47 = vld [vmem:[%s1666_s9 + $0x4c] sm:$0xf] }
  0x37   : > { %v396_v21 = vrot.slane %v394_v52, 5  ;;  %1450 = vmatprep.mubr.msk.bf16.mxu0 %vm518_vm2, %v1366_v11  ;;  %v400_v32 = vshll.u32 %v1830_v57, 16  ;;  %v404_v59 = vshrl.u32 %v1830_v57, 16  ;;  %v410_v22 = vshll.u32 %v1833_v3, 16 }
  0x38   : > { %v389_v58 = vsel %vm1745_vm5, %v384_v10, %v388_v43  ;;  %1418 = vmatprep.mubr.msk.bf16.mxu1 %vm518_vm2, %v1324_v18  ;;  %1451 = vmatmul.mubr.msk.bf16.vlgmr.msra.gmra.mrb[0].mxu0 %vm518_vm2, %v1367_v17  ;;  %v415_v62 = vshrl.u32 %v1843_v8, 16  ;;  %v418_v63 = vshll.u32 %v1843_v8, 16  ;;  %v424_v6 = vshll.u32 %v1846_v29, 16  ;;  %v1903_v18 = vld [vmem:[%s1666_s9 + $0x58] sm:$0xf] }
  0x39   : > { %v1325_v44 = vcombine.low %v379_v9, %v389_v58  ;;  %v397_v60 = vor.u32 %v396_v21, %v393_v19  ;;  %v402_v1 = vrot.slane %v400_v32, 5  ;;  %v406_v4 = vrot.slane %v404_v59, 4  ;;  %v1889_v9 = vld [vmem:[%s1666_s9 + $0x50] sm:$0x1]  ;;  %v1910_v58 = vld [vmem:[%s1666_s9 + $0x5c] sm:$0x1] }
  0x3a   : > { %v412_v5 = vrot.slane %v410_v22, 5  ;;  %v417_v13 = vrot.slane %v415_v62, 4  ;;  %v420_v14 = vrot.slane %v418_v63, 5  ;;  %v428_v15 = vshrl.u32 %v1846_v29, 16 }
  0x3b   : > { %1419 = vmatmul.mubr.msk.bf16.gmra.mrb[4].mxu1 %vm518_vm2, %v1325_v44  ;;  %v398_v7 = vrot.slane %v397_v60, 4  ;;  %v407_v20 = vor.u32 %v406_v4, %v402_v1  ;;  %v426_v23 = vrot.slane %v424_v6, 5  ;;  %v434_v24 = vshll.u32 %v1857_v61, 16 }
  0x3c   : > { %v1358_v25 = vrot.slane %v1751_v40, 9  ;;  %v421_v27 = vor.u32 %v420_v14, %v417_v13  ;;  %v430_v28 = vrot.slane %v428_v15, 4  ;;  %v840_v30 = vrot.slane %v1757_v45, 5 }
  0x3d   : > { %v403_v26 = vsel %vm1745_vm5, %v398_v7, %v402_v1  ;;  %v408_v34 = vrot.slane %v407_v20, 4  ;;  %v436_v36 = vrot.slane %v434_v24, 5  ;;  %v843_v37 = vrot.slane %v1779_v0, 5 }
  0x3e   : > { %v1359_v38 = vrot.slane %v1762_v50, 9  ;;  %v422_v39 = vrot.slane %v421_v27, 4  ;;  %v431_v40 = vor.u32 %v430_v28, %v426_v23  ;;  %v841_v41 = vsel %vm1805_vm8, %v1358_v25, %v840_v30 }
  0x3f   : > { %v842_v42 = vrot.slane %v840_v30, 4  ;;  %v413_v43 = vsel %vm1745_vm5, %v408_v34, %v412_v5  ;;  %v847_v45 = vrot.slane %v1768_v55, 5  ;;  %v850_v46 = vrot.slane %v1788_v16, 5 }
  0x40   : > { %v439_v0 = vshrl.u32 %v1870_v33, 16  ;;  %v1326_v48 = vcombine.low %v403_v26, %v413_v43  ;;  %v427_v50 = vsel %vm1745_vm5, %v422_v39, %v426_v23  ;;  %v432_v49 = vrot.slane %v431_v40, 4 }
  0x41   : > { %v844_v52 = vsel %vm1805_vm8, %v842_v42, %v843_v37  ;;  %v848_v16 = vsel %vm1805_vm8, %v1359_v38, %v847_v45  ;;  %v849_v54 = vrot.slane %v847_v45, 4  ;;  %v442_v10 = vshll.u32 %v1870_v33, 16 }
  0x42   : > { %v1368_v55 = vcombine.low %v841_v41, %v844_v52  ;;  %v441_v56 = vrot.slane %v439_v0, 4  ;;  %1422 = vmatprep.mubr.msk.bf16.mxu1 %vm518_vm2, %v1326_v48  ;;  %v437_v2 = vsel %vm1745_vm5, %v432_v49, %v436_v36  ;;  %v448_v11 = vshll.u32 %v1881_v47, 16 }
  0x43   : > { %v452_v12 = vshrl.u32 %v1881_v47, 16  ;;  %v1327_v17 = vcombine.low %v427_v50, %v437_v2  ;;  %v851_v19 = vsel %vm1805_vm8, %v849_v54, %v850_v46  ;;  %v458_v21 = vshll.u32 %v1889_v9, 16 }
  0x44   : > { %1454 = vmatprep.mubr.msk.bf16.mxu0 %vm518_vm2, %v1368_v55  ;;  %v463_v32 = vshrl.u32 %v1892_v53, 16  ;;  %v1369_v59 = vcombine.low %v848_v16, %v851_v19  ;;  %v444_v22 = vrot.slane %v442_v10, 5  ;;  %v450_v44 = vrot.slane %v448_v11, 5 }
  0x45   : > { %v454_v60 = vrot.slane %v452_v12, 4  ;;  %1423 = vmatmul.mubr.msk.bf16.gmra.mrb[8].mxu1 %vm518_vm2, %v1327_v17  ;;  %v460_v62 = vrot.slane %v458_v21, 5  ;;  %v466_v1 = vshll.u32 %v1892_v53, 16  ;;  %v472_v4 = vshll.u32 %v1903_v18, 16 }
  0x46   : > { %v465_v63 = vrot.slane %v463_v32, 4  ;;  %1455 = vmatmul.mubr.msk.bf16.gmra.mrb[4].mxu0 %vm518_vm2, %v1369_v59  ;;  %v445_v5 = vor.u32 %v444_v22, %v441_v56  ;;  %v476_v7 = vshrl.u32 %v1903_v18, 16  ;;  %v482_v13 = vshll.u32 %v1910_v58, 16 }
  0x47   : > { %v455_v6 = vor.u32 %v454_v60, %v450_v44  ;;  %v468_v14 = vrot.slane %v466_v1, 5  ;;  %v474_v15 = vrot.slane %v472_v4, 5  ;;  %v1360_v20 = vrot.slane %v1797_v31, 9 }
  0x48   : > { %v854_v23 = vrot.slane %v1830_v57, 5  ;;  %v446_v24 = vrot.slane %v445_v5, 4  ;;  %v478_v26 = vrot.slane %v476_v7, 4  ;;  %v484_v27 = vrot.slane %v482_v13, 5 }
  0x49   : > { %v456_v25 = vrot.slane %v455_v6, 4  ;;  %v469_v28 = vor.u32 %v468_v14, %v465_v63  ;;  %v857_v36 = vrot.slane %v1833_v3, 5  ;;  %v1361_v40 = vrot.slane %v1843_v8, 9 }
  0x4a   : > { %v855_v30 = vsel %vm1805_vm8, %v1360_v20, %v854_v23  ;;  %v856_v34 = vrot.slane %v854_v23, 4  ;;  %v451_v37 = vsel %vm1745_vm5, %v446_v24, %v450_v44  ;;  %v479_v39 = vor.u32 %v478_v26, %v474_v15 }
  0x4b   : > { %v461_v38 = vsel %vm1745_vm5, %v456_v25, %v460_v62  ;;  %v470_v42 = vrot.slane %v469_v28, 4  ;;  %v861_v45 = vrot.slane %v1846_v29, 5  ;;  %v864_v3 = vrot.slane %v1857_v61, 5 }
  0x4c   : > { %v1328_v41 = vcombine.low %v451_v37, %v461_v38  ;;  %v858_v43 = vsel %vm1805_vm8, %v856_v34, %v857_v36  ;;  %v480_v46 = vrot.slane %v479_v39, 4  ;;  %v1343_v52 = vcombine.low %v1797_v31, %v1830_v57 }
  0x4d   : > { %v1370_v0 = vcombine.low %v855_v30, %v858_v43  ;;  %v475_v48 = vsel %vm1745_vm5, %v470_v42, %v474_v15  ;;  %v862_v50 = vsel %vm1805_vm8, %v1361_v40, %v861_v45  ;;  %v863_v49 = vrot.slane %v861_v45, 4 }
  0x4e   : > { %1426 = vmatprep.mubr.msk.bf16.mxu1 %vm518_vm2, %v1328_v41  ;;  %v485_v55 = vsel %vm1745_vm5, %v480_v46, %v484_v27  ;;  %v1362_v16 = vrot.slane %v1870_v33, 9  ;;  %v868_v61 = vrot.slane %v1881_v47, 5  ;;  %v871_v54 = vrot.slane %v1889_v9, 5 }
  0x4f   : > { %1458 = vmatprep.mubr.msk.bf16.mxu0 %vm518_vm2, %v1370_v0  ;;  %v1329_v56 = vcombine.low %v475_v48, %v485_v55  ;;  %v865_v2 = vsel %vm1805_vm8, %v863_v49, %v864_v3  ;;  %v1363_v10 = vrot.slane %v1892_v53, 9  ;;  %v875_v11 = vrot.slane %v1903_v18, 5 }
  0x50   : > { %v1371_v31 = vcombine.low %v862_v50, %v865_v2  ;;  %v869_v35 = vsel %vm1805_vm8, %v1362_v16, %v868_v61  ;;  %v870_v57 = vrot.slane %v868_v61, 4  ;;  %v878_v12 = vrot.slane %v1910_v58, 5 }
  0x51   : > { %1427 = vmatmul.mubr.msk.bf16.gmra.mrb[12].mxu1 %vm518_vm2, %v1329_v56  ;;  %v877_v17 = vrot.slane %v875_v11, 4  ;;  %v876_v21 = vsel %vm1805_vm8, %v1363_v10, %v875_v11  ;;  %v1344_v58 = vcombine.low %v1843_v8, %v1846_v29  ;;  %v1345_v22 = vcombine.low %v1870_v33, %v1881_v47 }
  0x52   : > { %1459 = vmatmul.mubr.msk.bf16.gmra.mrb[8].mxu0 %vm518_vm2, %v1371_v31  ;;  %1440 = vmatprep.mubr.msk.bf16.mxu1 %vm518_vm2, %v1343_v52  ;;  %v872_v9 = vsel %vm1805_vm8, %v870_v57, %v871_v54  ;;  %v1346_v51 = vcombine.low %v1892_v53, %v1903_v18  ;;  %vm1052_vm9 = vcmask 31744   ;;  %vm1108_vm10 = vcmask 24576  }
  0x53   : > { %v1372_v19 = vcombine.low %v869_v35, %v872_v9  ;;  %v879_v32 = vsel %vm1805_vm8, %v877_v17, %v878_v12 }
  0x54   : > { %v1373_v59 = vcombine.low %v876_v21, %v879_v32 }
  0x55   : > { %1462 = vmatprep.mubr.msk.bf16.mxu0 %vm518_vm2, %v1372_v19 }
  0x59   : > { %1441 = vmatmul.mubr.msk.bf16.vlgmr.msra.gmra.mrb[8].mxu1 %vm518_vm2, %v1344_v58 }
  0x5a   : > { %1463 = vmatmul.mubr.msk.bf16.gmra.mrb[12].mxu0 %vm518_vm2, %v1373_v59  ;;  %1444 = vmatprep.mubr.msk.bf16.mxu1 %vm518_vm2, %v1345_v22 }
  0x61   : > { %1445 = vmatmul.mubr.msk.bf16.gmra.mrb[12].mxu1 %vm518_vm2, %v1346_v51 }
 0x104   : > { %v1416_v44 = vpop.f32.mrb[0].mxu1 }
 0x105   : > { %v581_v8 = vpop.f32.mrb[1].mxu1 }
 0x106   : > { %v1417_v29 = vpop.f32.mrb[2].mxu1 }
 0x107   : > { %v584_v60 = vpop.f32.mrb[3].mxu1 }
 0x10b   : > { %v1452_v62 = vpop.f32.mrb[0].mxu0 }
 0x10c   : > { %v1468_v33 = vadd.f32 %v1452_v62, %v1416_v44  ;;  %v973_v47 = vpop.f32.mrb[1].mxu0 }
 0x10d   : > { %v1469_v1 = vadd.f32 %v973_v47, %v581_v8  ;;  %v1453_v4 = vpop.f32.mrb[2].mxu0 }
 0x10e   : > { %v1420_v63 = vpop.f32.mrb[4].mxu1  ;;  %1055 = vst.msk [vmem:[%s1671_s13 + $0x10] sm:$0xff] %vm1052_vm9, %v1468_v33  ;;  %v1470_v53 = vadd.f32 %v1453_v4, %v1417_v29  ;;  %v976_v18 = vpop.f32.mrb[3].mxu0  ;;  %v1113_v15 = vmul.f32 %v1468_v33, %v1468_v33  ;;  %v1073_v26 = vsel %vm1052_vm9, %v1468_v33, 0.0 }
 0x10f   : > { %v597_v5 = vpop.f32.mrb[5].mxu1  ;;  %1053 = vst.msk [vmem:[%s1671_s13] sm:$0xff] %vm1052_vm9, %v1469_v1  ;;  %v1111_v7 = vmul.f32 %v1469_v1, %v1469_v1  ;;  %v1471_v13 = vadd.f32 %v976_v18, %v584_v60  ;;  %v1070_v20 = vsel %vm1052_vm9, %v1469_v1, 0.0 }
 0x110   : > { %v1421_v6 = vpop.f32.mrb[6].mxu1  ;;  %1056 = vst.msk [vmem:[%s1671_s13 + $0x18] sm:$0xff] %vm1052_vm9, %v1470_v53  ;;  %v1114_v28 = vmul.f32 %v1470_v53, %v1470_v53  ;;  %v1130_v37 = vsel %vm1052_vm9, %v1113_v15, 0.0  ;;  %v1075_v38 = vsel %vm1052_vm9, %v1470_v53, 0.0 }
 0x111   : > { %v600_v14 = vpop.f32.mrb[7].mxu1  ;;  %1054 = vst.msk [vmem:[%s1671_s13 + $0x8] sm:$0xff] %vm1052_vm9, %v1471_v13  ;;  %v1071_v23 = vsel %vm1052_vm9, %v1471_v13, 0.0  ;;  %v1112_v24 = vmul.f32 %v1471_v13, %v1471_v13  ;;  %v1127_v27 = vsel %vm1052_vm9, %v1111_v7, 0.0 }
 0x112   : > { %v1072_v25 = vadd.f32 %v1071_v23, %v1070_v20  ;;  %v1132_v41 = vsel %vm1052_vm9, %v1114_v28, 0.0 }
 0x113   : > { %v1128_v30 = vsel %vm1052_vm9, %v1112_v24, 0.0 }
 0x114   : > { %v1074_v34 = vadd.f32 %v1073_v26, %v1072_v25  ;;  %v1129_v36 = vadd.f32 %v1128_v30, %v1127_v27 }
 0x116   : > { %v1131_v39 = vadd.f32 %v1130_v37, %v1129_v36  ;;  %v1076_v40 = vadd.f32 %v1075_v38, %v1074_v34 }
 0x118   : > { %v1133_v42 = vadd.f32 %v1132_v41, %v1131_v39 }
 0x119   : > { %v1456_v43 = vpop.f32.mrb[4].mxu0 }
 0x11a   : > { %v1472_v45 = vadd.f32 %v1456_v43, %v1420_v63  ;;  %v989_v46 = vpop.f32.mrb[5].mxu0 }
 0x11b   : > { %v1473_v0 = vadd.f32 %v989_v46, %v597_v5  ;;  %v1457_v3 = vpop.f32.mrb[6].mxu0 }
 0x11c   : > { %1059 = vst.msk [vmem:[%s1671_s13 + $0x30] sm:$0xff] %vm1052_vm9, %v1472_v45  ;;  %v1474_v48 = vadd.f32 %v1457_v3, %v1421_v6  ;;  %v992_v50 = vpop.f32.mrb[7].mxu0  ;;  %v1117_v61 = vmul.f32 %v1472_v45, %v1472_v45  ;;  %v1081_v31 = vsel %vm1052_vm9, %v1472_v45, 0.0 }
 0x11d   : > { %1057 = vst.msk [vmem:[%s1671_s13 + $0x20] sm:$0xff] %vm1052_vm9, %v1473_v0  ;;  %v1077_v49 = vsel %vm1052_vm9, %v1473_v0, 0.0  ;;  %v1115_v52 = vmul.f32 %v1473_v0, %v1473_v0  ;;  %v1475_v55 = vadd.f32 %v992_v50, %v600_v14 }
 0x11e   : > { %v1078_v16 = vadd.f32 %v1077_v49, %v1076_v40  ;;  %1060 = vst.msk [vmem:[%s1671_s13 + $0x38] sm:$0xff] %vm1052_vm9, %v1474_v48  ;;  %v1118_v35 = vmul.f32 %v1474_v48, %v1474_v48  ;;  %v1138_v9 = vsel %vm1052_vm9, %v1117_v61, 0.0  ;;  %v1083_v19 = vsel %vm1052_vm9, %v1474_v48, 0.0 }
 0x11f   : > { %v1134_v54 = vsel %vm1052_vm9, %v1115_v52, 0.0  ;;  %1058 = vst.msk [vmem:[%s1671_s13 + $0x28] sm:$0xff] %vm1052_vm9, %v1475_v55  ;;  %v1079_v56 = vsel %vm1052_vm9, %v1475_v55, 0.0  ;;  %v1116_v2 = vmul.f32 %v1475_v55, %v1475_v55 }
 0x120   : > { %v1135_v10 = vadd.f32 %v1134_v54, %v1133_v42  ;;  %v1080_v11 = vadd.f32 %v1079_v56, %v1078_v16  ;;  %v1140_v58 = vsel %vm1052_vm9, %v1118_v35, 0.0 }
 0x121   : > { %v1136_v57 = vsel %vm1052_vm9, %v1116_v2, 0.0 }
 0x122   : > { %v1082_v12 = vadd.f32 %v1081_v31, %v1080_v11  ;;  %v1137_v17 = vadd.f32 %v1136_v57, %v1135_v10 }
 0x124   : > { %v1139_v21 = vadd.f32 %v1138_v9, %v1137_v17  ;;  %v1084_v32 = vadd.f32 %v1083_v19, %v1082_v12 }
 0x125   : > { %v1460_v59 = vpop.f32.mrb[8].mxu0 }
 0x126   : > { %v1005_v22 = vpop.f32.mrb[9].mxu0  ;;  %v1141_v51 = vadd.f32 %v1140_v58, %v1139_v21 }
 0x127   : > { %v1461_v44 = vpop.f32.mrb[10].mxu0 }
 0x128   : > { %v1008_v8 = vpop.f32.mrb[11].mxu0 }
 0x12c   : > { %v1442_v29 = vpop.f32.mrb[8].mxu1 }
 0x12d   : > { %v1476_v60 = vadd.f32 %v1460_v59, %v1442_v29  ;;  %v782_v62 = vpop.f32.mrb[9].mxu1  ;;  %v1464_v33 = vpop.f32.mrb[12].mxu0 }
 0x12e   : > { %v1477_v47 = vadd.f32 %v1005_v22, %v782_v62  ;;  %v1443_v63 = vpop.f32.mrb[10].mxu1  ;;  %v1021_v1 = vpop.f32.mrb[13].mxu0 }
 0x12f   : > { %1063 = vst.msk [vmem:[%s1671_s13 + $0x50] sm:$0xff] %vm1052_vm9, %v1476_v60  ;;  %v1478_v4 = vadd.f32 %v1461_v44, %v1443_v63  ;;  %v785_v5 = vpop.f32.mrb[11].mxu1  ;;  %v1465_v53 = vpop.f32.mrb[14].mxu0  ;;  %v1121_v15 = vmul.f32 %v1476_v60, %v1476_v60  ;;  %v1089_v28 = vsel %vm1052_vm9, %v1476_v60, 0.0 }
 0x130   : > { %1061 = vst.msk [vmem:[%s1671_s13 + $0x40] sm:$0xff] %vm1052_vm9, %v1477_v47  ;;  %v1085_v18 = vsel %vm1052_vm9, %v1477_v47, 0.0  ;;  %v1119_v6 = vmul.f32 %v1477_v47, %v1477_v47  ;;  %v1479_v7 = vadd.f32 %v1008_v8, %v785_v5  ;;  %v1024_v13 = vpop.f32.mrb[15].mxu0  ;;  %v1069_v47 = vld [vmem:[%s1661_s30] sm:$0x1] }
 0x131   : > { %v1086_v14 = vadd.f32 %v1085_v18, %v1084_v32  ;;  %1064 = vst.msk [vmem:[%s1671_s13 + $0x58] sm:$0xff] %vm1052_vm9, %v1478_v4  ;;  %v1122_v26 = vmul.f32 %v1478_v4, %v1478_v4  ;;  %v1146_v40 = vsel %vm1052_vm9, %v1121_v15, 0.0  ;;  %v1091_v41 = vsel %vm1052_vm9, %v1478_v4, 0.0 }
 0x132   : > { %v1142_v20 = vsel %vm1052_vm9, %v1119_v6, 0.0  ;;  %1062 = vst.msk [vmem:[%s1671_s13 + $0x48] sm:$0xff] %vm1052_vm9, %v1479_v7  ;;  %v1087_v23 = vsel %vm1052_vm9, %v1479_v7, 0.0  ;;  %v1120_v24 = vmul.f32 %v1479_v7, %v1479_v7 }
 0x133   : > { %v1143_v25 = vadd.f32 %v1142_v20, %v1141_v51  ;;  %v1088_v27 = vadd.f32 %v1087_v23, %v1086_v14  ;;  %v1148_v45 = vsel %vm1052_vm9, %v1122_v26, 0.0 }
 0x134   : > { %v1144_v30 = vsel %vm1052_vm9, %v1120_v24, 0.0  ;;  %v1446_v34 = vpop.f32.mrb[12].mxu1 }
 0x135   : > { %v1090_v36 = vadd.f32 %v1089_v28, %v1088_v27  ;;  %v1145_v37 = vadd.f32 %v1144_v30, %v1143_v25  ;;  %v1480_v38 = vadd.f32 %v1464_v33, %v1446_v34  ;;  %v798_v39 = vpop.f32.mrb[13].mxu1 }
 0x136   : > { %v1481_v42 = vadd.f32 %v1021_v1, %v798_v39  ;;  %v1447_v43 = vpop.f32.mrb[14].mxu1 }
 0x137   : > { %v1147_v46 = vadd.f32 %v1146_v40, %v1145_v37  ;;  %1067 = vst.msk [vmem:[%s1671_s13 + $0x70] sm:$0xff] %vm1052_vm9, %v1480_v38  ;;  %v1092_v0 = vadd.f32 %v1091_v41, %v1090_v36  ;;  %v801_v3 = vpop.f32.mrb[15].mxu1  ;;  %v1482_v49 = vadd.f32 %v1465_v53, %v1447_v43  ;;  %v1125_v56 = vmul.f32 %v1480_v38, %v1480_v38  ;;  %v1110_v53 = vld [vmem:[%s1676_s24] sm:$0x1] }
 0x138   : > { %1065 = vst.msk [vmem:[%s1671_s13 + $0x60] sm:$0xff] %vm1052_vm9, %v1481_v42  ;;  %v1093_v48 = vsel %vm1052_vm9, %v1481_v42, 0.0  ;;  %v1123_v50 = vmul.f32 %v1481_v42, %v1481_v42  ;;  %v1483_v52 = vadd.f32 %v1024_v13, %v801_v3  ;;  %v1097_v31 = vsel %vm1052_vm9, %v1480_v38, 0.0 }
 0x139   : > { %v1094_v55 = vadd.f32 %v1093_v48, %v1092_v0  ;;  %v1149_v16 = vadd.f32 %v1148_v45, %v1147_v46  ;;  %1068 = vst.msk [vmem:[%s1671_s13 + $0x78] sm:$0xff] %vm1052_vm9, %v1482_v49  ;;  %v1126_v35 = vmul.f32 %v1482_v49, %v1482_v49  ;;  %v1099_v17 = vsel %vm1052_vm9, %v1482_v49, 0.0 }
 0x13a   : > { %v1150_v61 = vsel %vm1052_vm9, %v1123_v50, 0.0  ;;  %1066 = vst.msk [vmem:[%s1671_s13 + $0x68] sm:$0xff] %vm1052_vm9, %v1483_v52  ;;  %v1095_v54 = vsel %vm1052_vm9, %v1483_v52, 0.0  ;;  %v1124_v11 = vmul.f32 %v1483_v52, %v1483_v52  ;;  %v1154_v19 = vsel %vm1052_vm9, %v1125_v56, 0.0 }
 0x13b   : > { %v1151_v2 = vadd.f32 %v1150_v61, %v1149_v16  ;;  %v1096_v10 = vadd.f32 %v1095_v54, %v1094_v55  ;;  %v1156_v58 = vsel %vm1052_vm9, %v1126_v35, 0.0 }
 0x13c   : > { %v1152_v12 = vsel %vm1052_vm9, %v1124_v11, 0.0 }
 0x13d   : > { %v1098_v57 = vadd.f32 %v1097_v31, %v1096_v10  ;;  %v1153_v9 = vadd.f32 %v1152_v12, %v1151_v2 }
 0x13f   : > { %v1100_v21 = vadd.f32 %v1099_v17, %v1098_v57  ;;  %v1155_v32 = vadd.f32 %v1154_v19, %v1153_v9 }
 0x141   : > { %v1101_v59 = vrot.slane %v1100_v21, 4  ;;  %v1157_v22 = vadd.f32 %v1156_v58, %v1155_v32 }
 0x143   : > { %v1102_v51 = vadd.f32 %v1101_v59, %v1100_v21  ;;  %v1158_v44 = vrot.slane %v1157_v22, 4 }
 0x145   : > { %v1103_v8 = vrot.slane %v1102_v51, 2  ;;  %v1159_v29 = vadd.f32 %v1158_v44, %v1157_v22 }
 0x147   : > { %v1104_v60 = vadd.f32 %v1103_v8, %v1102_v51  ;;  %v1160_v62 = vrot.slane %v1159_v29, 2 }
 0x149   : > { %v1105_v33 = vrot.slane %v1104_v60, 1  ;;  %v1161_v63 = vadd.f32 %v1160_v62, %v1159_v29 }
 0x14b   : > { %v1106_v1 = vadd.f32 %v1105_v33, %v1104_v60  ;;  %v1162_v4 = vrot.slane %v1161_v63, 1 }
 0x14d   : > { %v1107_v5 = vadd.f32 %v1106_v1, %v1069_v47  ;;  %v1163_v18 = vadd.f32 %v1162_v4, %v1161_v63 }
 0x14f   : > { %1109 = vst.msk [vmem:[%s1661_s30] sm:$0x1] %vm1108_vm10, %v1107_v5  ;;  %v1164_v6 = vadd.f32 %v1163_v18, %v1110_v53 }
 0x151   : > { %1165 = vst.msk [vmem:[%s1676_s24] sm:$0x1] %vm1108_vm10, %v1164_v6 }
 0x152 PF: > { %s15_s19 = sadd.s32 1, %s1596_s19   ;;  %s2065_s15 = smov %s1588_s17 }
 0x153   : > { %p12_p9 = scmp.ge.s32.totalorder %s15_s19, 6   ;;  %s2066_s16 = smov %s1592_s18 }
 0x154   : > { %s2067_s17 = smov %s2070_s20  ;;  %s2068_s18 = smov %s2074_s21 }
 0x155   :  { %14 = sbr.rel (!%p12_p9) target bundleno = 3 (0x3), region = 88 }

</bundles_post_ra>
